<compile_context>
chip_gen: v7x
topology: tpu7x:2x2x1
jax: 0.10.0
libtpu: 0.0.40
codegen_flags: <defaults>
</compile_context>

<pallas_src>
import functools
import math

import jax
import jax.numpy as jnp
import numpy as np
from jax import lax
from jax.experimental import pallas as pl
from jax.experimental.pallas import tpu as pltpu


# ----------------------------------------------------------------------------
# Fused, block-streamed kernel.
# grid = (batch_tiles, NB):  step (b, k) runs residual block k on batch tile b.
#   k == 0      : also runs the input conv (writes the persistent `act` scratch)
#   k == NB - 1 : also runs global average pool + final Linear(C -> 320)
# ----------------------------------------------------------------------------
def _fused_kernel(x_ref, mthin_ref, mc_ref, pool_ref, exp_ref,
                  in_w_ref, in_b_ref,
                  w1_ref, s1_ref, t1_ref, w2_ref, s2_ref, t2_ref,
                  sew1_ref, seb1_ref, sew2_ref, seb2_ref,
                  pw_ref, pb_ref,
                  out_ref, act_ref, *, W, NB, inv_hw):
    blk = pl.program_id(1)
    M = act_ref.shape[0]
    bf16 = jnp.bfloat16

    def conv3x3(act, w_bf16, scale, shift, relu, cm1, cp1, rm1, rp1):
        """3x3 SAME conv as one im2col matmul.

        act: (M, Cin) f32, rows flattened as b*H*W + i*W + j; a tap (di, dj) is a
        sublane roll by di*W + dj.  Only the dj=+-1 rolls are unaligned; the di
        taps reuse the dj bases via aligned +-W rolls.  Out-of-board taps are
        zeroed by the 0/1 masks (column mask on the dj base, row mask per tap).
        """
        # dj-shifted bases, kept in f32 so the +-1 sublane shifts stay 32-bit clean.
        b_m1 = pltpu.roll(act, 1, 0) * cm1             # dj = -1
        b_p1 = pltpu.roll(act, M - 1, 0) * cp1         # dj = +1
        bases = (b_m1, act, b_p1)                      # dj = -1, 0, +1

        cols = []
        for rmask, row_shift in ((rm1, W), (None, 0), (rp1, M - W)):   # di = -1,0,+1
            for base in bases:                                         # dj = -1,0,+1
                t = base if row_shift == 0 else pltpu.roll(base, row_shift, 0)
                if rmask is not None:
                    t = t * rmask
                cols.append(t.astype(bf16))            # bf16 patch assembly
        patches = jnp.concatenate(cols, axis=1)        # (M, 9*Cin) bf16
        acc = jnp.dot(patches, w_bf16, preferred_element_type=jnp.float32)
        if scale is not None:
            acc = acc * scale
        acc = acc + shift
        return jnp.maximum(acc, 0.0) if relu else acc

    def pool(a_f32):
        """Per-image mean over H*W as a small MXU matmul: (M, C) -> (BT, C)."""
        return jnp.dot(pool_ref[...], a_f32.astype(bf16),
                       preferred_element_type=jnp.float32) * inv_hw

    # ---- input conv (bias only), once per batch tile ---------------------------
    @pl.when(blk == 0)
    def _():
        mt = [mthin_ref[i] for i in range(4)]          # thin (M, 1) masks
        act_ref[...] = conv3x3(x_ref[...], in_w_ref[...], None, in_b_ref[...],
                               False, *mt)

    # ---- one residual SE block per grid step (weights streamed per block) ------
    mc = [mc_ref[i] for i in range(4)]                 # lane-dense (M, C) masks

    res = act_ref[...]                                                  # (M, C) f32
    h = conv3x3(res, w1_ref[0], s1_ref[0], t1_ref[0], True, *mc)
    h = conv3x3(h, w2_ref[0], s2_ref[0], t2_ref[0], False, *mc)

    # Squeeze-Excitation: squeeze + gate re-broadcast as small MXU matmuls.
    pooled = pool(h)                                                    # (BT, C)
    z = jnp.dot(pooled.astype(bf16), sew1_ref[0],
                preferred_element_type=jnp.float32) + seb1_ref[0]
    z = jnp.maximum(z, 0.0)
    gate = jax.nn.sigmoid(
        jnp.dot(z.astype(bf16), sew2_ref[0],
                preferred_element_type=jnp.float32) + seb2_ref[0])      # (BT, C)
    gate_rows = jnp.dot(exp_ref[...], gate.astype(bf16),
                        preferred_element_type=jnp.float32)             # (M, C)

    # Excite + residual + ReLU (f32 VPU work).
    act_ref[...] = jnp.maximum(h * gate_rows + res, 0.0)

    # ---- global average pool + final Linear(C -> 320), once per batch tile -----
    @pl.when(blk == NB - 1)
    def _():
        p = pool(act_ref[...])                                          # (BT, C)
        out_ref[0] = (jnp.dot(p.astype(bf16), pw_ref[...],
                              preferred_element_type=jnp.float32) + pb_ref[...])


# ----------------------------------------------------------------------------
# pallas_call wrapper (PyTorch-style NCHW input -> (B, 320))
# ----------------------------------------------------------------------------
try:
    _SINGLE_BUFFERED = pl.Buffered(1)    # single-buffer inputs whose block never changes
except Exception:                        # older jax without pl.Buffered
    _SINGLE_BUFFERED = None


def _const_spec(shape):
    """BlockSpec for an input whose block index is constant over the whole grid."""
    zeros = (0,) * len(shape)
    index_map = lambda b, k, _z=zeros: _z
    if _SINGLE_BUFFERED is not None:
        try:
            return pl.BlockSpec(shape, index_map, pipeline_mode=_SINGLE_BUFFERED)
        except TypeError:                # jax without the pipeline_mode kwarg
            pass
    return pl.BlockSpec(shape, index_map)


def _pick_batch_tile(B):
    """Largest divisor of B (<= 8, or <= 32 for big batches) leaving >= 2 grid steps."""
    max_bt = 32 if B >= 64 else 8
    divisors = [d for d in range(1, min(B, max_bt) + 1) if B % d == 0]
    multi = [d for d in divisors if B // d >= 2]       # keep both v7x TensorCores busy
    return max(multi) if multi else max(divisors)


def move_feature_extractor(x_nchw, params):
    """PyTorch-equivalent forward.  x_nchw: (B, Cin, H, W) -> (B, 320) float32."""
    x = jnp.transpose(x_nchw, (0, 2, 3, 1)).astype(jnp.float32)        # NCHW -> NHWC
    B, H, W, Cin = x.shape
    C = params["in_w"].shape[-1]
    Cr = params["blocks"][0]["se_w1"].shape[-1]
    NB = len(params["blocks"])
    D = params["proj_w"].shape[-1]

    BT = _pick_batch_tile(B)
    HW = H * W
    M = BT * HW
    G = B // BT
    grid = (G, NB)

    # Host-side constants --------------------------------------------------------
    ii, jj = np.meshgrid(np.arange(H), np.arange(W), indexing="ij")
    m4 = np.stack([(jj - 1 >= 0), (jj + 1 < W),        # column masks (dj = -1, +1)
                   (ii - 1 >= 0), (ii + 1 < H)])       # row masks    (di = -1, +1)
    m4 = np.tile(m4.reshape(4, HW).astype(np.float32), (1, BT))        # (4, M)
    masks_thin = jnp.asarray(m4[..., None])                            # (4, M, 1)
    masks_c = jnp.asarray(np.broadcast_to(m4[..., None], (4, M, C)).copy())

    pool01 = np.kron(np.eye(BT, dtype=np.float32), np.ones((1, HW), np.float32))
    pool_bf = jnp.asarray(pool01, jnp.bfloat16)                        # (BT, M)
    exp_bf = jnp.asarray(np.ascontiguousarray(pool01.T), jnp.bfloat16) # (M, BT)

    bf16 = jnp.bfloat16
    x2d = x.reshape(B * HW, Cin)                                       # rows = b*HW + i*W + j
    in_w = params["in_w"].reshape(9 * Cin, C).astype(bf16)             # im2col weight
    in_b = params["in_shift"]                                          # (1, C) conv bias

    stack = lambda fn: jnp.stack([fn(b) for b in params["blocks"]], axis=0)
    w1 = stack(lambda b: b["w1"].reshape(9 * C, C)).astype(bf16)       # (NB, 9C, C)
    s1 = stack(lambda b: b["scale1"])                                  # (NB, 1, C)
    t1 = stack(lambda b: b["shift1"])
    w2 = stack(lambda b: b["w2"].reshape(9 * C, C)).astype(bf16)
    s2 = stack(lambda b: b["scale2"])
    t2 = stack(lambda b: b["shift2"])
    sew1 = stack(lambda b: b["se_w1"]).astype(bf16)                    # (NB, C, Cr)
    seb1 = stack(lambda b: b["se_b1"])                                 # (NB, 1, Cr)
    sew2 = stack(lambda b: b["se_w2"]).astype(bf16)                    # (NB, Cr, C)
    seb2 = stack(lambda b: b["se_b2"])                                 # (NB, 1, C)
    pw = params["proj_w"].astype(bf16)                                 # (C, D)
    pb = params["proj_b"]                                              # (1, D)

    perblk = lambda shape: pl.BlockSpec(shape, lambda b, k: (k, 0, 0))  # streamed weights

    in_specs = [
        pl.BlockSpec((M, Cin), lambda b, k: (b, 0)),   # input rows for this batch tile
        _const_spec((4, M, 1)),                        # thin tap masks (input conv)
        _const_spec((4, M, C)),                        # lane-dense tap masks
        _const_spec((BT, M)),                          # 0/1 pooling matrix
        _const_spec((M, BT)),                          # 0/1 gate-expansion matrix
        _const_spec((9 * Cin, C)),                     # input conv weight (im2col)
        _const_spec((1, C)),                           # input conv bias
        perblk((1, 9 * C, C)),                         # conv1 weight
        perblk((1, 1, C)),                             # bn1 scale
        perblk((1, 1, C)),                             # bn1 shift (+ conv1 bias)
        perblk((1, 9 * C, C)),                         # conv2 weight
        perblk((1, 1, C)),                             # bn2 scale
        perblk((1, 1, C)),                             # bn2 shift (+ conv2 bias)
        perblk((1, C, Cr)),                            # SE fc1 weight
        perblk((1, 1, Cr)),                            # SE fc1 bias
        perblk((1, Cr, C)),                            # SE fc2 weight
        perblk((1, 1, C)),                             # SE fc2 bias
        _const_spec((C, D)),                           # final proj weight
        _const_spec((1, D)),                           # final proj bias
    ]

    # VMEM budget from actual per-step buffer sizes (floor 32 MiB, cap 64 MiB so it
    # is safe on v7x's smaller physical VMEM; the streamed design keeps residency low).
    step_bytes = (
        2 * M * Cin * 4                                          # x tile (double buffered)
        + 4 * M * 4 + 4 * M * C * 4                              # masks
        + 2 * BT * M * 2                                         # pool / expand matrices
        + (9 * Cin * C + C * D) * 2 + (C + D) * 4                # input conv + final proj
        + 2 * (2 * 9 * C * C * 2 + 4 * C * 4                     # 2 resident streamed blocks
               + 2 * C * Cr * 2 + (C + Cr) * 4)
        + 2 * BT * D * 4                                         # output tile
        + M * C * 4                                              # act scratch
        + 2 * M * 9 * C * 2 + 6 * M * C * 4                      # patches + live temps (rough)
    )
    vmem_limit = int(max(32 * 1024 * 1024, min(64 * 1024 * 1024, 2 * step_bytes)))

    kernel = functools.partial(_fused_kernel, W=W, NB=NB, inv_hw=1.0 / float(HW))

    out3 = pl.pallas_call(
        kernel,
        out_shape=jax.ShapeDtypeStruct((G, BT, D), jnp.float32),
        grid=grid,
        in_specs=in_specs,
        out_specs=pl.BlockSpec((1, BT, D), lambda b, k: (b, 0, 0)),
        scratch_shapes=[pltpu.VMEM((M, C), jnp.float32)],        # persistent activations
        compiler_params=pltpu.CompilerParams(
            dimension_semantics=("parallel", "arbitrary"),
            vmem_limit_bytes=vmem_limit,
        ),
    )(x2d, masks_thin, masks_c, pool_bf, exp_bf, in_w, in_b,
      w1, s1, t1, w2, s2, t2, sew1, seb1, sew2, seb2, pw, pb)

    return out3.reshape(B, D)


# ----------------------------------------------------------------------------
# Parameters (deterministic synthetic init, eval-mode BN folded into scale/shift)
# ----------------------------------------------------------------------------
_BN_EPS = 1e-5


def _fold_bn(conv_bias, gamma, beta, mean, var):
    scale = gamma / jnp.sqrt(var + _BN_EPS)
    shift = beta + scale * (conv_bias - mean)
    return scale.reshape(1, -1), shift.reshape(1, -1)


def init_params(key, input_channels, channel_size, num_blocks,
                out_dim=320, reduction_ratio=8):
    keys = list(jax.random.split(key, 8 + 16 * num_blocks))
    ki = iter(keys)

    def normal(shape, scale):
        return scale * jax.random.normal(next(ki), shape, jnp.float32)

    def conv_w(ci, co):
        return normal((3, 3, ci, co), 1.0 / (3.0 * math.sqrt(ci)))      # HWIO

    def bn_pack(c):
        gamma = 1.0 + normal((c,), 0.1)
        beta = normal((c,), 0.1)
        mean = normal((c,), 0.1)
        var = 0.9 + 0.2 * jax.nn.sigmoid(normal((c,), 1.0))
        return gamma, beta, mean, var

    params = {}
    params["in_w"] = conv_w(input_channels, channel_size)
    params["in_shift"] = normal((channel_size,), 0.1).reshape(1, -1)     # conv bias

    cr = channel_size // reduction_ratio
    blocks = []
    for _ in range(num_blocks):
        blk = {}
        blk["w1"] = conv_w(channel_size, channel_size)
        b1 = normal((channel_size,), 0.1)
        blk["scale1"], blk["shift1"] = _fold_bn(b1, *bn_pack(channel_size))
        blk["w2"] = conv_w(channel_size, channel_size)
        b2 = normal((channel_size,), 0.1)
        blk["scale2"], blk["shift2"] = _fold_bn(b2, *bn_pack(channel_size))
        blk["se_w1"] = normal((channel_size, cr), 1.0 / math.sqrt(channel_size))
        blk["se_b1"] = normal((1, cr), 0.1)
        blk["se_w2"] = normal((cr, channel_size), 1.0 / math.sqrt(cr))
        blk["se_b2"] = normal((1, channel_size), 0.1)
        blocks.append(blk)
    params["blocks"] = blocks

    params["proj_w"] = normal((channel_size, out_dim), 1.0 / math.sqrt(channel_size))
    params["proj_b"] = normal((1, out_dim), 0.1)
    return params


# ----------------------------------------------------------------------------
# Pure-JAX reference.  matmul_dtype=bf16 mirrors the kernel's mixed precision
# (bf16 matmul inputs, f32 accumulation); matmul_dtype=f32 is the exact module.
# ----------------------------------------------------------------------------
def _ref_forward(x_nchw, params, matmul_dtype=jnp.float32):
    md = matmul_dtype
    x = jnp.transpose(x_nchw, (0, 2, 3, 1)).astype(jnp.float32)

    def conv(x, w, scale, shift, relu):
        y = lax.conv_general_dilated(
            x.astype(md), w.astype(md), (1, 1), "SAME",
            dimension_numbers=("NHWC", "HWIO", "NHWC"),
            preferred_element_type=jnp.float32)
        if scale is not None:
            y = y * scale.reshape(1, 1, 1, -1)
        y = y + shift.reshape(1, 1, 1, -1)
        return jnp.maximum(y, 0.0) if relu else y

    def mm(a, w):
        return jnp.dot(a.astype(md), w.astype(md),
                       preferred_element_type=jnp.float32)

    x = conv(x, params["in_w"], None, params["in_shift"], False)
    for blk in params["blocks"]:
        residual = x
        out = conv(x, blk["w1"], blk["scale1"], blk["shift1"], True)
        out = conv(out, blk["w2"], blk["scale2"], blk["shift2"], False)
        pooled = jnp.mean(out, axis=(1, 2))                              # (B, C)
        h = jnp.maximum(mm(pooled, blk["se_w1"]) + blk["se_b1"], 0.0)
        s = jax.nn.sigmoid(mm(h, blk["se_w2"]) + blk["se_b2"])           # (B, C)
        x = jnp.maximum(out * s[:, None, None, :] + residual, 0.0)
    pooled = jnp.mean(x, axis=(1, 2))
    return mm(pooled, params["proj_w"]) + params["proj_b"]


# ----------------------------------------------------------------------------
if __name__ == "__main__":
    # Small shapes consistent with the module: 8x8 chess-board spatial grid,
    # reduced channels / block count for a quick synthetic run.
    B, Cin, H, W = 2, 8, 8, 8
    channel_size, num_blocks = 32, 2

    key = jax.random.PRNGKey(0)
    k_x, k_p = jax.random.split(key)
    x = jax.random.normal(k_x, (B, Cin, H, W), jnp.float32)              # NCHW like PyTorch
    params = init_params(k_p, Cin, channel_size, num_blocks)

    out = jax.jit(move_feature_extractor)(x, params)
    out = jax.block_until_ready(out)
    assert out.shape == (B, 320) and out.dtype == jnp.float32

    # Check vs a reference mirroring the kernel's bf16-matmul / f32-accum mixed
    # precision, plus a looser sanity check vs the pure-f32 module math.
    ref_mixed = jax.block_until_ready(_ref_forward(x, params, jnp.bfloat16))
    np.testing.assert_allclose(np.asarray(out), np.asarray(ref_mixed),
                               rtol=3e-2, atol=3e-2)
    ref_f32 = jax.block_until_ready(_ref_forward(x, params, jnp.float32))
    np.testing.assert_allclose(np.asarray(out), np.asarray(ref_f32),
                               rtol=6e-2, atol=6e-2)

    print("KERNEL_OK")
</pallas_src>

<mosaic_0001>
module attributes {stable_mosaic.version = 11 : i64} {
  func.func @_fused_kernel(%arg0: i32, %arg1: i32, %arg2: memref<64x8xf32, #tpu.memory_space<vmem>>, %arg3: memref<4x64x1xf32, #tpu.memory_space<vmem>>, %arg4: memref<4x64x32xf32, #tpu.memory_space<vmem>>, %arg5: memref<1x64xbf16, #tpu.memory_space<vmem>>, %arg6: memref<64x1xbf16, #tpu.memory_space<vmem>>, %arg7: memref<72x32xbf16, #tpu.memory_space<vmem>>, %arg8: memref<1x32xf32, #tpu.memory_space<vmem>>, %arg9: memref<1x288x32xbf16, #tpu.memory_space<vmem>>, %arg10: memref<1x1x32xf32, #tpu.memory_space<vmem>>, %arg11: memref<1x1x32xf32, #tpu.memory_space<vmem>>, %arg12: memref<1x288x32xbf16, #tpu.memory_space<vmem>>, %arg13: memref<1x1x32xf32, #tpu.memory_space<vmem>>, %arg14: memref<1x1x32xf32, #tpu.memory_space<vmem>>, %arg15: memref<1x32x4xbf16, #tpu.memory_space<vmem>>, %arg16: memref<1x1x4xf32, #tpu.memory_space<vmem>>, %arg17: memref<1x4x32xbf16, #tpu.memory_space<vmem>>, %arg18: memref<1x1x32xf32, #tpu.memory_space<vmem>>, %arg19: memref<32x320xbf16, #tpu.memory_space<vmem>>, %arg20: memref<1x320xf32, #tpu.memory_space<vmem>>, %arg21: memref<1x1x320xf32, #tpu.memory_space<vmem>>, %arg22: memref<64x32xf32, #tpu.memory_space<vmem>>) attributes {dimension_semantics = [#tpu.dimension_semantics<parallel>, #tpu.dimension_semantics<arbitrary>], iteration_bounds = array<i64: 2, 2>, scalar_prefetch = 0 : i64, scratch_operands = 1 : i64, tpu.core_type = #tpu.core_type<tc>, window_params = [{transform_indices = @transform_0, window_bounds = array<i64: 64, 8>}, {pipeline_mode = #tpu.pipeline_mode<synchronous>, transform_indices = @transform_1, window_bounds = array<i64: 4, 64, 1>}, {pipeline_mode = #tpu.pipeline_mode<synchronous>, transform_indices = @transform_2, window_bounds = array<i64: 4, 64, 32>}, {pipeline_mode = #tpu.pipeline_mode<synchronous>, transform_indices = @transform_3, window_bounds = array<i64: 1, 64>}, {pipeline_mode = #tpu.pipeline_mode<synchronous>, transform_indices = @transform_4, window_bounds = array<i64: 64, 1>}, {pipeline_mode = #tpu.pipeline_mode<synchronous>, transform_indices = @transform_5, window_bounds = array<i64: 72, 32>}, {pipeline_mode = #tpu.pipeline_mode<synchronous>, transform_indices = @transform_6, window_bounds = array<i64: 1, 32>}, {transform_indices = @transform_7, window_bounds = array<i64: 1, 288, 32>}, {transform_indices = @transform_8, window_bounds = array<i64: 1, 1, 32>}, {transform_indices = @transform_9, window_bounds = array<i64: 1, 1, 32>}, {transform_indices = @transform_10, window_bounds = array<i64: 1, 288, 32>}, {transform_indices = @transform_11, window_bounds = array<i64: 1, 1, 32>}, {transform_indices = @transform_12, window_bounds = array<i64: 1, 1, 32>}, {transform_indices = @transform_13, window_bounds = array<i64: 1, 32, 4>}, {transform_indices = @transform_14, window_bounds = array<i64: 1, 1, 4>}, {transform_indices = @transform_15, window_bounds = array<i64: 1, 4, 32>}, {transform_indices = @transform_16, window_bounds = array<i64: 1, 1, 32>}, {pipeline_mode = #tpu.pipeline_mode<synchronous>, transform_indices = @transform_17, window_bounds = array<i64: 32, 320>}, {pipeline_mode = #tpu.pipeline_mode<synchronous>, transform_indices = @transform_18, window_bounds = array<i64: 1, 320>}, {transform_indices = @transform_19, window_bounds = array<i64: 1, 1, 320>}]} {
    %c0_i32 = arith.constant 0 : i32
    %0 = arith.cmpi eq, %arg1, %c0_i32 : i32
    %1 = arith.extui %0 : i1 to i32
    %c0_i32_0 = arith.constant 0 : i32
    %2 = arith.cmpi ne, %1, %c0_i32_0 : i32
    scf.if %2 {
      %c0_71 = arith.constant 0 : index
      %c0_72 = arith.constant 0 : index
      %c0_73 = arith.constant 0 : index
      %125 = vector.load %arg3[%c0_71, %c0_72, %c0_73] : memref<4x64x1xf32, #tpu.memory_space<vmem>>, vector<1x64x1xf32>
      %126 = vector.shape_cast %125 : vector<1x64x1xf32> to vector<64x1xf32>
      %c1_74 = arith.constant 1 : index
      %c0_75 = arith.constant 0 : index
      %c0_76 = arith.constant 0 : index
      %127 = vector.load %arg3[%c1_74, %c0_75, %c0_76] : memref<4x64x1xf32, #tpu.memory_space<vmem>>, vector<1x64x1xf32>
      %128 = vector.shape_cast %127 : vector<1x64x1xf32> to vector<64x1xf32>
      %c2_77 = arith.constant 2 : index
      %c0_78 = arith.constant 0 : index
      %c0_79 = arith.constant 0 : index
      %129 = vector.load %arg3[%c2_77, %c0_78, %c0_79] : memref<4x64x1xf32, #tpu.memory_space<vmem>>, vector<1x64x1xf32>
      %130 = vector.shape_cast %129 : vector<1x64x1xf32> to vector<64x1xf32>
      %c3_80 = arith.constant 3 : index
      %c0_81 = arith.constant 0 : index
      %c0_82 = arith.constant 0 : index
      %131 = vector.load %arg3[%c3_80, %c0_81, %c0_82] : memref<4x64x1xf32, #tpu.memory_space<vmem>>, vector<1x64x1xf32>
      %132 = vector.shape_cast %131 : vector<1x64x1xf32> to vector<64x1xf32>
      %c0_83 = arith.constant 0 : index
      %c0_84 = arith.constant 0 : index
      %133 = vector.load %arg2[%c0_83, %c0_84] : memref<64x8xf32, #tpu.memory_space<vmem>>, vector<64x8xf32>
      %c0_85 = arith.constant 0 : index
      %c0_86 = arith.constant 0 : index
      %134 = vector.load %arg7[%c0_85, %c0_86] : memref<72x32xbf16, #tpu.memory_space<vmem>>, vector<72x32xbf16>
      %c0_87 = arith.constant 0 : index
      %c0_88 = arith.constant 0 : index
      %135 = vector.load %arg8[%c0_87, %c0_88] : memref<1x32xf32, #tpu.memory_space<vmem>>, vector<1x32xf32>
      %c1_i32_89 = arith.constant 1 : i32
      %136 = tpu.dynamic_rotate %133 by %c1_i32_89 dim 0 : vector<64x8xf32>, i32 -> vector<64x8xf32>
      %137 = vector.broadcast %126 : vector<64x1xf32> to vector<64x8xf32>
      %138 = arith.mulf %136, %137 : vector<64x8xf32>
      %c63_i32_90 = arith.constant 63 : i32
      %139 = tpu.dynamic_rotate %133 by %c63_i32_90 dim 0 : vector<64x8xf32>, i32 -> vector<64x8xf32>
      %140 = vector.broadcast %128 : vector<64x1xf32> to vector<64x8xf32>
      %141 = arith.mulf %139, %140 : vector<64x8xf32>
      %c8_i32_91 = arith.constant 8 : i32
      %142 = tpu.dynamic_rotate %138 by %c8_i32_91 dim 0 : vector<64x8xf32>, i32 -> vector<64x8xf32>
      %143 = vector.broadcast %130 : vector<64x1xf32> to vector<64x8xf32>
      %144 = arith.mulf %142, %143 : vector<64x8xf32>
      %145 = arith.truncf %144 : vector<64x8xf32> to vector<64x8xbf16>
      %c8_i32_92 = arith.constant 8 : i32
      %146 = tpu.dynamic_rotate %133 by %c8_i32_92 dim 0 : vector<64x8xf32>, i32 -> vector<64x8xf32>
      %147 = vector.broadcast %130 : vector<64x1xf32> to vector<64x8xf32>
      %148 = arith.mulf %146, %147 : vector<64x8xf32>
      %149 = arith.truncf %148 : vector<64x8xf32> to vector<64x8xbf16>
      %c8_i32_93 = arith.constant 8 : i32
      %150 = tpu.dynamic_rotate %141 by %c8_i32_93 dim 0 : vector<64x8xf32>, i32 -> vector<64x8xf32>
      %151 = vector.broadcast %130 : vector<64x1xf32> to vector<64x8xf32>
      %152 = arith.mulf %150, %151 : vector<64x8xf32>
      %153 = arith.truncf %152 : vector<64x8xf32> to vector<64x8xbf16>
      %154 = arith.truncf %138 : vector<64x8xf32> to vector<64x8xbf16>
      %155 = arith.truncf %133 : vector<64x8xf32> to vector<64x8xbf16>
      %156 = arith.truncf %141 : vector<64x8xf32> to vector<64x8xbf16>
      %c56_i32_94 = arith.constant 56 : i32
      %157 = tpu.dynamic_rotate %138 by %c56_i32_94 dim 0 : vector<64x8xf32>, i32 -> vector<64x8xf32>
      %158 = vector.broadcast %132 : vector<64x1xf32> to vector<64x8xf32>
      %159 = arith.mulf %157, %158 : vector<64x8xf32>
      %160 = arith.truncf %159 : vector<64x8xf32> to vector<64x8xbf16>
      %c56_i32_95 = arith.constant 56 : i32
      %161 = tpu.dynamic_rotate %133 by %c56_i32_95 dim 0 : vector<64x8xf32>, i32 -> vector<64x8xf32>
      %162 = vector.broadcast %132 : vector<64x1xf32> to vector<64x8xf32>
      %163 = arith.mulf %161, %162 : vector<64x8xf32>
      %164 = arith.truncf %163 : vector<64x8xf32> to vector<64x8xbf16>
      %c56_i32_96 = arith.constant 56 : i32
      %165 = tpu.dynamic_rotate %141 by %c56_i32_96 dim 0 : vector<64x8xf32>, i32 -> vector<64x8xf32>
      %166 = vector.broadcast %132 : vector<64x1xf32> to vector<64x8xf32>
      %167 = arith.mulf %165, %166 : vector<64x8xf32>
      %168 = arith.truncf %167 : vector<64x8xf32> to vector<64x8xbf16>
      %169 = tpu.concatenate %145, %149, %153, %154, %155, %156, %160, %164, %168 in 1 : vector<64x8xbf16>, vector<64x8xbf16>, vector<64x8xbf16>, vector<64x8xbf16>, vector<64x8xbf16>, vector<64x8xbf16>, vector<64x8xbf16>, vector<64x8xbf16>, vector<64x8xbf16> -> vector<64x72xbf16>
      %cst_97 = arith.constant dense<0.000000e+00> : vector<64x32xf32>
      %170 = tpu.matmul %169, %134, %cst_97 {dimension_numbers = #tpu.dot_dimension_numbers<[1], [0], [0], [1], [0, 0, 1, 1], [], []>} : vector<64x72xbf16>, vector<72x32xbf16>, vector<64x32xf32> -> vector<64x32xf32>
      %171 = vector.broadcast %135 : vector<1x32xf32> to vector<64x32xf32>
      %172 = arith.addf %170, %171 : vector<64x32xf32>
      %c0_98 = arith.constant 0 : index
      %c0_99 = arith.constant 0 : index
      %173 = vector.load %arg22[%c0_98, %c0_99] : memref<64x32xf32, #tpu.memory_space<vmem>>, vector<64x32xf32>
      tpu.vector_store %arg22[%c0_98, %c0_99], %172 {strides = array<i32>} : memref<64x32xf32, #tpu.memory_space<vmem>>, vector<64x32xf32>,
    } else {
    }
    %c0 = arith.constant 0 : index
    %c0_1 = arith.constant 0 : index
    %c0_2 = arith.constant 0 : index
    %3 = vector.load %arg4[%c0, %c0_1, %c0_2] : memref<4x64x32xf32, #tpu.memory_space<vmem>>, vector<1x64x32xf32>
    %4 = vector.shape_cast %3 : vector<1x64x32xf32> to vector<64x32xf32>
    %c1 = arith.constant 1 : index
    %c0_3 = arith.constant 0 : index
    %c0_4 = arith.constant 0 : index
    %5 = vector.load %arg4[%c1, %c0_3, %c0_4] : memref<4x64x32xf32, #tpu.memory_space<vmem>>, vector<1x64x32xf32>
    %6 = vector.shape_cast %5 : vector<1x64x32xf32> to vector<64x32xf32>
    %c2 = arith.constant 2 : index
    %c0_5 = arith.constant 0 : index
    %c0_6 = arith.constant 0 : index
    %7 = vector.load %arg4[%c2, %c0_5, %c0_6] : memref<4x64x32xf32, #tpu.memory_space<vmem>>, vector<1x64x32xf32>
    %8 = vector.shape_cast %7 : vector<1x64x32xf32> to vector<64x32xf32>
    %c3 = arith.constant 3 : index
    %c0_7 = arith.constant 0 : index
    %c0_8 = arith.constant 0 : index
    %9 = vector.load %arg4[%c3, %c0_7, %c0_8] : memref<4x64x32xf32, #tpu.memory_space<vmem>>, vector<1x64x32xf32>
    %10 = vector.shape_cast %9 : vector<1x64x32xf32> to vector<64x32xf32>
    %c0_9 = arith.constant 0 : index
    %c0_10 = arith.constant 0 : index
    %11 = vector.load %arg22[%c0_9, %c0_10] : memref<64x32xf32, #tpu.memory_space<vmem>>, vector<64x32xf32>
    %c0_11 = arith.constant 0 : index
    %c0_12 = arith.constant 0 : index
    %c0_13 = arith.constant 0 : index
    %12 = vector.load %arg9[%c0_11, %c0_12, %c0_13] : memref<1x288x32xbf16, #tpu.memory_space<vmem>>, vector<1x288x32xbf16>
    %13 = vector.shape_cast %12 : vector<1x288x32xbf16> to vector<288x32xbf16>
    %c0_14 = arith.constant 0 : index
    %c0_15 = arith.constant 0 : index
    %c0_16 = arith.constant 0 : index
    %14 = vector.load %arg10[%c0_14, %c0_15, %c0_16] : memref<1x1x32xf32, #tpu.memory_space<vmem>>, vector<1x1x32xf32>
    %15 = vector.shape_cast %14 : vector<1x1x32xf32> to vector<1x32xf32>
    %c0_17 = arith.constant 0 : index
    %c0_18 = arith.constant 0 : index
    %c0_19 = arith.constant 0 : index
    %16 = vector.load %arg11[%c0_17, %c0_18, %c0_19] : memref<1x1x32xf32, #tpu.memory_space<vmem>>, vector<1x1x32xf32>
    %17 = vector.shape_cast %16 : vector<1x1x32xf32> to vector<1x32xf32>
    %c1_i32 = arith.constant 1 : i32
    %18 = tpu.dynamic_rotate %11 by %c1_i32 dim 0 : vector<64x32xf32>, i32 -> vector<64x32xf32>
    %19 = arith.mulf %18, %4 : vector<64x32xf32>
    %c63_i32 = arith.constant 63 : i32
    %20 = tpu.dynamic_rotate %11 by %c63_i32 dim 0 : vector<64x32xf32>, i32 -> vector<64x32xf32>
    %21 = arith.mulf %20, %6 : vector<64x32xf32>
    %c8_i32 = arith.constant 8 : i32
    %22 = tpu.dynamic_rotate %19 by %c8_i32 dim 0 : vector<64x32xf32>, i32 -> vector<64x32xf32>
    %23 = arith.mulf %22, %8 : vector<64x32xf32>
    %24 = arith.truncf %23 : vector<64x32xf32> to vector<64x32xbf16>
    %c8_i32_20 = arith.constant 8 : i32
    %25 = tpu.dynamic_rotate %11 by %c8_i32_20 dim 0 : vector<64x32xf32>, i32 -> vector<64x32xf32>
    %26 = arith.mulf %25, %8 : vector<64x32xf32>
    %27 = arith.truncf %26 : vector<64x32xf32> to vector<64x32xbf16>
    %c8_i32_21 = arith.constant 8 : i32
    %28 = tpu.dynamic_rotate %21 by %c8_i32_21 dim 0 : vector<64x32xf32>, i32 -> vector<64x32xf32>
    %29 = arith.mulf %28, %8 : vector<64x32xf32>
    %30 = arith.truncf %29 : vector<64x32xf32> to vector<64x32xbf16>
    %31 = arith.truncf %19 : vector<64x32xf32> to vector<64x32xbf16>
    %32 = arith.truncf %11 : vector<64x32xf32> to vector<64x32xbf16>
    %33 = arith.truncf %21 : vector<64x32xf32> to vector<64x32xbf16>
    %c56_i32 = arith.constant 56 : i32
    %34 = tpu.dynamic_rotate %19 by %c56_i32 dim 0 : vector<64x32xf32>, i32 -> vector<64x32xf32>
    %35 = arith.mulf %34, %10 : vector<64x32xf32>
    %36 = arith.truncf %35 : vector<64x32xf32> to vector<64x32xbf16>
    %c56_i32_22 = arith.constant 56 : i32
    %37 = tpu.dynamic_rotate %11 by %c56_i32_22 dim 0 : vector<64x32xf32>, i32 -> vector<64x32xf32>
    %38 = arith.mulf %37, %10 : vector<64x32xf32>
    %39 = arith.truncf %38 : vector<64x32xf32> to vector<64x32xbf16>
    %c56_i32_23 = arith.constant 56 : i32
    %40 = tpu.dynamic_rotate %21 by %c56_i32_23 dim 0 : vector<64x32xf32>, i32 -> vector<64x32xf32>
    %41 = arith.mulf %40, %10 : vector<64x32xf32>
    %42 = arith.truncf %41 : vector<64x32xf32> to vector<64x32xbf16>
    %43 = tpu.concatenate %24, %27, %30, %31, %32, %33, %36, %39, %42 in 1 : vector<64x32xbf16>, vector<64x32xbf16>, vector<64x32xbf16>, vector<64x32xbf16>, vector<64x32xbf16>, vector<64x32xbf16>, vector<64x32xbf16>, vector<64x32xbf16>, vector<64x32xbf16> -> vector<64x288xbf16>
    %cst = arith.constant dense<0.000000e+00> : vector<64x32xf32>
    %44 = tpu.matmul %43, %13, %cst {dimension_numbers = #tpu.dot_dimension_numbers<[1], [0], [0], [1], [0, 0, 1, 1], [], []>} : vector<64x288xbf16>, vector<288x32xbf16>, vector<64x32xf32> -> vector<64x32xf32>
    %45 = vector.broadcast %15 : vector<1x32xf32> to vector<64x32xf32>
    %46 = arith.mulf %44, %45 : vector<64x32xf32>
    %47 = vector.broadcast %17 : vector<1x32xf32> to vector<64x32xf32>
    %48 = arith.addf %46, %47 : vector<64x32xf32>
    %cst_24 = arith.constant 0.000000e+00 : f32
    %49 = vector.broadcast %cst_24 : f32 to vector<64x32xf32>
    %50 = arith.maximumf %48, %49 : vector<64x32xf32>
    %c0_25 = arith.constant 0 : index
    %c0_26 = arith.constant 0 : index
    %c0_27 = arith.constant 0 : index
    %51 = vector.load %arg12[%c0_25, %c0_26, %c0_27] : memref<1x288x32xbf16, #tpu.memory_space<vmem>>, vector<1x288x32xbf16>
    %52 = vector.shape_cast %51 : vector<1x288x32xbf16> to vector<288x32xbf16>
    %c0_28 = arith.constant 0 : index
    %c0_29 = arith.constant 0 : index
    %c0_30 = arith.constant 0 : index
    %53 = vector.load %arg13[%c0_28, %c0_29, %c0_30] : memref<1x1x32xf32, #tpu.memory_space<vmem>>, vector<1x1x32xf32>
    %54 = vector.shape_cast %53 : vector<1x1x32xf32> to vector<1x32xf32>
    %c0_31 = arith.constant 0 : index
    %c0_32 = arith.constant 0 : index
    %c0_33 = arith.constant 0 : index
    %55 = vector.load %arg14[%c0_31, %c0_32, %c0_33] : memref<1x1x32xf32, #tpu.memory_space<vmem>>, vector<1x1x32xf32>
    %56 = vector.shape_cast %55 : vector<1x1x32xf32> to vector<1x32xf32>
    %c1_i32_34 = arith.constant 1 : i32
    %57 = tpu.dynamic_rotate %50 by %c1_i32_34 dim 0 : vector<64x32xf32>, i32 -> vector<64x32xf32>
    %58 = arith.mulf %57, %4 : vector<64x32xf32>
    %c63_i32_35 = arith.constant 63 : i32
    %59 = tpu.dynamic_rotate %50 by %c63_i32_35 dim 0 : vector<64x32xf32>, i32 -> vector<64x32xf32>
    %60 = arith.mulf %59, %6 : vector<64x32xf32>
    %c8_i32_36 = arith.constant 8 : i32
    %61 = tpu.dynamic_rotate %58 by %c8_i32_36 dim 0 : vector<64x32xf32>, i32 -> vector<64x32xf32>
    %62 = arith.mulf %61, %8 : vector<64x32xf32>
    %63 = arith.truncf %62 : vector<64x32xf32> to vector<64x32xbf16>
    %c8_i32_37 = arith.constant 8 : i32
    %64 = tpu.dynamic_rotate %50 by %c8_i32_37 dim 0 : vector<64x32xf32>, i32 -> vector<64x32xf32>
    %65 = arith.mulf %64, %8 : vector<64x32xf32>
    %66 = arith.truncf %65 : vector<64x32xf32> to vector<64x32xbf16>
    %c8_i32_38 = arith.constant 8 : i32
    %67 = tpu.dynamic_rotate %60 by %c8_i32_38 dim 0 : vector<64x32xf32>, i32 -> vector<64x32xf32>
    %68 = arith.mulf %67, %8 : vector<64x32xf32>
    %69 = arith.truncf %68 : vector<64x32xf32> to vector<64x32xbf16>
    %70 = arith.truncf %58 : vector<64x32xf32> to vector<64x32xbf16>
    %71 = arith.truncf %50 : vector<64x32xf32> to vector<64x32xbf16>
    %72 = arith.truncf %60 : vector<64x32xf32> to vector<64x32xbf16>
    %c56_i32_39 = arith.constant 56 : i32
    %73 = tpu.dynamic_rotate %58 by %c56_i32_39 dim 0 : vector<64x32xf32>, i32 -> vector<64x32xf32>
    %74 = arith.mulf %73, %10 : vector<64x32xf32>
    %75 = arith.truncf %74 : vector<64x32xf32> to vector<64x32xbf16>
    %c56_i32_40 = arith.constant 56 : i32
    %76 = tpu.dynamic_rotate %50 by %c56_i32_40 dim 0 : vector<64x32xf32>, i32 -> vector<64x32xf32>
    %77 = arith.mulf %76, %10 : vector<64x32xf32>
    %78 = arith.truncf %77 : vector<64x32xf32> to vector<64x32xbf16>
    %c56_i32_41 = arith.constant 56 : i32
    %79 = tpu.dynamic_rotate %60 by %c56_i32_41 dim 0 : vector<64x32xf32>, i32 -> vector<64x32xf32>
    %80 = arith.mulf %79, %10 : vector<64x32xf32>
    %81 = arith.truncf %80 : vector<64x32xf32> to vector<64x32xbf16>
    %82 = tpu.concatenate %63, %66, %69, %70, %71, %72, %75, %78, %81 in 1 : vector<64x32xbf16>, vector<64x32xbf16>, vector<64x32xbf16>, vector<64x32xbf16>, vector<64x32xbf16>, vector<64x32xbf16>, vector<64x32xbf16>, vector<64x32xbf16>, vector<64x32xbf16> -> vector<64x288xbf16>
    %cst_42 = arith.constant dense<0.000000e+00> : vector<64x32xf32>
    %83 = tpu.matmul %82, %52, %cst_42 {dimension_numbers = #tpu.dot_dimension_numbers<[1], [0], [0], [1], [0, 0, 1, 1], [], []>} : vector<64x288xbf16>, vector<288x32xbf16>, vector<64x32xf32> -> vector<64x32xf32>
    %84 = vector.broadcast %54 : vector<1x32xf32> to vector<64x32xf32>
    %85 = arith.mulf %83, %84 : vector<64x32xf32>
    %86 = vector.broadcast %56 : vector<1x32xf32> to vector<64x32xf32>
    %87 = arith.addf %85, %86 : vector<64x32xf32>
    %c0_43 = arith.constant 0 : index
    %c0_44 = arith.constant 0 : index
    %88 = vector.load %arg5[%c0_43, %c0_44] : memref<1x64xbf16, #tpu.memory_space<vmem>>, vector<1x64xbf16>
    %89 = arith.truncf %87 : vector<64x32xf32> to vector<64x32xbf16>
    %cst_45 = arith.constant dense<0.000000e+00> : vector<1x32xf32>
    %90 = tpu.matmul %88, %89, %cst_45 {dimension_numbers = #tpu.dot_dimension_numbers<[1], [0], [0], [1], [0, 0, 1, 1], [], []>} : vector<1x64xbf16>, vector<64x32xbf16>, vector<1x32xf32> -> vector<1x32xf32>
    %cst_46 = arith.constant 1.562500e-02 : f32
    %91 = vector.broadcast %cst_46 : f32 to vector<1x32xf32>
    %92 = arith.mulf %90, %91 : vector<1x32xf32>
    %93 = arith.truncf %92 : vector<1x32xf32> to vector<1x32xbf16>
    %c0_47 = arith.constant 0 : index
    %c0_48 = arith.constant 0 : index
    %c0_49 = arith.constant 0 : index
    %94 = vector.load %arg15[%c0_47, %c0_48, %c0_49] : memref<1x32x4xbf16, #tpu.memory_space<vmem>>, vector<1x32x4xbf16>
    %95 = vector.shape_cast %94 : vector<1x32x4xbf16> to vector<32x4xbf16>
    %cst_50 = arith.constant dense<0.000000e+00> : vector<1x4xf32>
    %96 = tpu.matmul %93, %95, %cst_50 {dimension_numbers = #tpu.dot_dimension_numbers<[1], [0], [0], [1], [0, 0, 1, 1], [], []>} : vector<1x32xbf16>, vector<32x4xbf16>, vector<1x4xf32> -> vector<1x4xf32>
    %c0_51 = arith.constant 0 : index
    %c0_52 = arith.constant 0 : index
    %c0_53 = arith.constant 0 : index
    %97 = vector.load %arg16[%c0_51, %c0_52, %c0_53] : memref<1x1x4xf32, #tpu.memory_space<vmem>>, vector<1x1x4xf32>
    %98 = vector.shape_cast %97 : vector<1x1x4xf32> to vector<1x4xf32>
    %99 = arith.addf %96, %98 : vector<1x4xf32>
    %cst_54 = arith.constant 0.000000e+00 : f32
    %100 = vector.broadcast %cst_54 : f32 to vector<1x4xf32>
    %101 = arith.maximumf %99, %100 : vector<1x4xf32>
    %102 = arith.truncf %101 : vector<1x4xf32> to vector<1x4xbf16>
    %c0_55 = arith.constant 0 : index
    %c0_56 = arith.constant 0 : index
    %c0_57 = arith.constant 0 : index
    %103 = vector.load %arg17[%c0_55, %c0_56, %c0_57] : memref<1x4x32xbf16, #tpu.memory_space<vmem>>, vector<1x4x32xbf16>
    %104 = vector.shape_cast %103 : vector<1x4x32xbf16> to vector<4x32xbf16>
    %cst_58 = arith.constant dense<0.000000e+00> : vector<1x32xf32>
    %105 = tpu.matmul %102, %104, %cst_58 {dimension_numbers = #tpu.dot_dimension_numbers<[1], [0], [0], [1], [0, 0, 1, 1], [], []>} : vector<1x4xbf16>, vector<4x32xbf16>, vector<1x32xf32> -> vector<1x32xf32>
    %c0_59 = arith.constant 0 : index
    %c0_60 = arith.constant 0 : index
    %c0_61 = arith.constant 0 : index
    %106 = vector.load %arg18[%c0_59, %c0_60, %c0_61] : memref<1x1x32xf32, #tpu.memory_space<vmem>>, vector<1x1x32xf32>
    %107 = vector.shape_cast %106 : vector<1x1x32xf32> to vector<1x32xf32>
    %108 = arith.addf %105, %107 : vector<1x32xf32>
    %109 = arith.negf %108 : vector<1x32xf32>
    %110 = math.exp %109 : vector<1x32xf32>
    %cst_62 = arith.constant 1.000000e+00 : f32
    %111 = vector.broadcast %cst_62 : f32 to vector<1x32xf32>
    %112 = arith.addf %111, %110 : vector<1x32xf32>
    %113 = arith.divf %111, %112 : vector<1x32xf32>
    %c0_63 = arith.constant 0 : index
    %c0_64 = arith.constant 0 : index
    %114 = vector.load %arg6[%c0_63, %c0_64] : memref<64x1xbf16, #tpu.memory_space<vmem>>, vector<64x1xbf16>
    %115 = arith.truncf %113 : vector<1x32xf32> to vector<1x32xbf16>
    %cst_65 = arith.constant dense<0.000000e+00> : vector<64x32xf32>
    %116 = tpu.matmul %114, %115, %cst_65 {dimension_numbers = #tpu.dot_dimension_numbers<[1], [0], [0], [1], [0, 0, 1, 1], [], []>} : vector<64x1xbf16>, vector<1x32xbf16>, vector<64x32xf32> -> vector<64x32xf32>
    %117 = arith.mulf %87, %116 : vector<64x32xf32>
    %118 = arith.addf %117, %11 : vector<64x32xf32>
    %cst_66 = arith.constant 0.000000e+00 : f32
    %119 = vector.broadcast %cst_66 : f32 to vector<64x32xf32>
    %120 = arith.maximumf %118, %119 : vector<64x32xf32>
    %c0_67 = arith.constant 0 : index
    %c0_68 = arith.constant 0 : index
    %121 = vector.load %arg22[%c0_67, %c0_68] : memref<64x32xf32, #tpu.memory_space<vmem>>, vector<64x32xf32>
    tpu.vector_store %arg22[%c0_67, %c0_68], %120 {strides = array<i32>} : memref<64x32xf32, #tpu.memory_space<vmem>>, vector<64x32xf32>,
    %c1_i32_69 = arith.constant 1 : i32
    %122 = arith.cmpi eq, %arg1, %c1_i32_69 : i32
    %123 = arith.extui %122 : i1 to i32
    %c0_i32_70 = arith.constant 0 : i32
    %124 = arith.cmpi ne, %123, %c0_i32_70 : i32
    scf.if %124 {
      %c0_71 = arith.constant 0 : index
      %c0_72 = arith.constant 0 : index
      %125 = vector.load %arg22[%c0_71, %c0_72] : memref<64x32xf32, #tpu.memory_space<vmem>>, vector<64x32xf32>
      %c0_73 = arith.constant 0 : index
      %c0_74 = arith.constant 0 : index
      %126 = vector.load %arg5[%c0_73, %c0_74] : memref<1x64xbf16, #tpu.memory_space<vmem>>, vector<1x64xbf16>
      %127 = arith.truncf %125 : vector<64x32xf32> to vector<64x32xbf16>
      %cst_75 = arith.constant dense<0.000000e+00> : vector<1x32xf32>
      %128 = tpu.matmul %126, %127, %cst_75 {dimension_numbers = #tpu.dot_dimension_numbers<[1], [0], [0], [1], [0, 0, 1, 1], [], []>} : vector<1x64xbf16>, vector<64x32xbf16>, vector<1x32xf32> -> vector<1x32xf32>
      %cst_76 = arith.constant 1.562500e-02 : f32
      %129 = vector.broadcast %cst_76 : f32 to vector<1x32xf32>
      %130 = arith.mulf %128, %129 : vector<1x32xf32>
      %131 = arith.truncf %130 : vector<1x32xf32> to vector<1x32xbf16>
      %c0_77 = arith.constant 0 : index
      %c0_78 = arith.constant 0 : index
      %132 = vector.load %arg19[%c0_77, %c0_78] : memref<32x320xbf16, #tpu.memory_space<vmem>>, vector<32x320xbf16>
      %cst_79 = arith.constant dense<0.000000e+00> : vector<1x320xf32>
      %133 = tpu.matmul %131, %132, %cst_79 {dimension_numbers = #tpu.dot_dimension_numbers<[1], [0], [0], [1], [0, 0, 1, 1], [], []>} : vector<1x32xbf16>, vector<32x320xbf16>, vector<1x320xf32> -> vector<1x320xf32>
      %c0_80 = arith.constant 0 : index
      %c0_81 = arith.constant 0 : index
      %134 = vector.load %arg20[%c0_80, %c0_81] : memref<1x320xf32, #tpu.memory_space<vmem>>, vector<1x320xf32>
      %135 = arith.addf %133, %134 : vector<1x320xf32>
      %c0_82 = arith.constant 0 : index
      %c0_83 = arith.constant 0 : index
      %c0_84 = arith.constant 0 : index
      %136 = vector.load %arg21[%c0_82, %c0_83, %c0_84] : memref<1x1x320xf32, #tpu.memory_space<vmem>>, vector<1x1x320xf32>
      %137 = vector.shape_cast %136 : vector<1x1x320xf32> to vector<1x320xf32>
      %138 = vector.shape_cast %135 : vector<1x320xf32> to vector<1x1x320xf32>
      tpu.vector_store %arg21[%c0_82, %c0_83, %c0_84], %138 {strides = array<i32>} : memref<1x1x320xf32, #tpu.memory_space<vmem>>, vector<1x1x320xf32>,
    } else {
    }
    return
  }
  func.func @transform_0(%arg0: i32, %arg1: i32) -> (i32, i32) {
    %c0_i32 = arith.constant 0 : i32
    %c0_i32_0 = arith.constant 0 : i32
    return %arg0, %c0_i32 : i32, i32
  }
  func.func @transform_1(%arg0: i32, %arg1: i32) -> (i32, i32, i32) {
    %c0_i32 = arith.constant 0 : i32
    %c0_i32_0 = arith.constant 0 : i32
    %c0_i32_1 = arith.constant 0 : i32
    %c0_i32_2 = arith.constant 0 : i32
    return %c0_i32, %c0_i32_0, %c0_i32_1 : i32, i32, i32
  }
  func.func @transform_2(%arg0: i32, %arg1: i32) -> (i32, i32, i32) {
    %c0_i32 = arith.constant 0 : i32
    %c0_i32_0 = arith.constant 0 : i32
    %c0_i32_1 = arith.constant 0 : i32
    %c0_i32_2 = arith.constant 0 : i32
    return %c0_i32, %c0_i32_0, %c0_i32_1 : i32, i32, i32
  }
  func.func @transform_3(%arg0: i32, %arg1: i32) -> (i32, i32) {
    %c0_i32 = arith.constant 0 : i32
    %c0_i32_0 = arith.constant 0 : i32
    %c0_i32_1 = arith.constant 0 : i32
    return %c0_i32, %c0_i32_0 : i32, i32
  }
  func.func @transform_4(%arg0: i32, %arg1: i32) -> (i32, i32) {
    %c0_i32 = arith.constant 0 : i32
    %c0_i32_0 = arith.constant 0 : i32
    %c0_i32_1 = arith.constant 0 : i32
    return %c0_i32, %c0_i32_0 : i32, i32
  }
  func.func @transform_5(%arg0: i32, %arg1: i32) -> (i32, i32) {
    %c0_i32 = arith.constant 0 : i32
    %c0_i32_0 = arith.constant 0 : i32
    %c0_i32_1 = arith.constant 0 : i32
    return %c0_i32, %c0_i32_0 : i32, i32
  }
  func.func @transform_6(%arg0: i32, %arg1: i32) -> (i32, i32) {
    %c0_i32 = arith.constant 0 : i32
    %c0_i32_0 = arith.constant 0 : i32
    %c0_i32_1 = arith.constant 0 : i32
    return %c0_i32, %c0_i32_0 : i32, i32
  }
  func.func @transform_7(%arg0: i32, %arg1: i32) -> (i32, i32, i32) {
    %c0_i32 = arith.constant 0 : i32
    %c0_i32_0 = arith.constant 0 : i32
    %c0_i32_1 = arith.constant 0 : i32
    return %arg1, %c0_i32, %c0_i32_0 : i32, i32, i32
  }
  func.func @transform_8(%arg0: i32, %arg1: i32) -> (i32, i32, i32) {
    %c0_i32 = arith.constant 0 : i32
    %c0_i32_0 = arith.constant 0 : i32
    %c0_i32_1 = arith.constant 0 : i32
    return %arg1, %c0_i32, %c0_i32_0 : i32, i32, i32
  }
  func.func @transform_9(%arg0: i32, %arg1: i32) -> (i32, i32, i32) {
    %c0_i32 = arith.constant 0 : i32
    %c0_i32_0 = arith.constant 0 : i32
    %c0_i32_1 = arith.constant 0 : i32
    return %arg1, %c0_i32, %c0_i32_0 : i32, i32, i32
  }
  func.func @transform_10(%arg0: i32, %arg1: i32) -> (i32, i32, i32) {
    %c0_i32 = arith.constant 0 : i32
    %c0_i32_0 = arith.constant 0 : i32
    %c0_i32_1 = arith.constant 0 : i32
    return %arg1, %c0_i32, %c0_i32_0 : i32, i32, i32
  }
  func.func @transform_11(%arg0: i32, %arg1: i32) -> (i32, i32, i32) {
    %c0_i32 = arith.constant 0 : i32
    %c0_i32_0 = arith.constant 0 : i32
    %c0_i32_1 = arith.constant 0 : i32
    return %arg1, %c0_i32, %c0_i32_0 : i32, i32, i32
  }
  func.func @transform_12(%arg0: i32, %arg1: i32) -> (i32, i32, i32) {
    %c0_i32 = arith.constant 0 : i32
    %c0_i32_0 = arith.constant 0 : i32
    %c0_i32_1 = arith.constant 0 : i32
    return %arg1, %c0_i32, %c0_i32_0 : i32, i32, i32
  }
  func.func @transform_13(%arg0: i32, %arg1: i32) -> (i32, i32, i32) {
    %c0_i32 = arith.constant 0 : i32
    %c0_i32_0 = arith.constant 0 : i32
    %c0_i32_1 = arith.constant 0 : i32
    return %arg1, %c0_i32, %c0_i32_0 : i32, i32, i32
  }
  func.func @transform_14(%arg0: i32, %arg1: i32) -> (i32, i32, i32) {
    %c0_i32 = arith.constant 0 : i32
    %c0_i32_0 = arith.constant 0 : i32
    %c0_i32_1 = arith.constant 0 : i32
    return %arg1, %c0_i32, %c0_i32_0 : i32, i32, i32
  }
  func.func @transform_15(%arg0: i32, %arg1: i32) -> (i32, i32, i32) {
    %c0_i32 = arith.constant 0 : i32
    %c0_i32_0 = arith.constant 0 : i32
    %c0_i32_1 = arith.constant 0 : i32
    return %arg1, %c0_i32, %c0_i32_0 : i32, i32, i32
  }
  func.func @transform_16(%arg0: i32, %arg1: i32) -> (i32, i32, i32) {
    %c0_i32 = arith.constant 0 : i32
    %c0_i32_0 = arith.constant 0 : i32
    %c0_i32_1 = arith.constant 0 : i32
    return %arg1, %c0_i32, %c0_i32_0 : i32, i32, i32
  }
  func.func @transform_17(%arg0: i32, %arg1: i32) -> (i32, i32) {
    %c0_i32 = arith.constant 0 : i32
    %c0_i32_0 = arith.constant 0 : i32
    %c0_i32_1 = arith.constant 0 : i32
    return %c0_i32, %c0_i32_0 : i32, i32
  }
  func.func @transform_18(%arg0: i32, %arg1: i32) -> (i32, i32) {
    %c0_i32 = arith.constant 0 : i32
    %c0_i32_0 = arith.constant 0 : i32
    %c0_i32_1 = arith.constant 0 : i32
    return %c0_i32, %c0_i32_0 : i32, i32
  }
  func.func @transform_19(%arg0: i32, %arg1: i32) -> (i32, i32, i32) {
    %c0_i32 = arith.constant 0 : i32
    %c0_i32_0 = arith.constant 0 : i32
    %c0_i32_1 = arith.constant 0 : i32
    return %arg0, %c0_i32, %c0_i32_0 : i32, i32, i32
  }
}

</mosaic_0001>

<bundles_post_ra>
// kernel: move_feature_extractor.1
= control target key start
LH: loop header
LB: loop body
LE: loop exit
PB: predicated region body
PF: predicated region fallthrough
CT: control target
= control target key end

     0   :  { %s4036_s30 = smov 0   ;;  %s4038_s20 = smov 0   ;;  %s5697_s0 = inlined_call_operand.vmem [shape: f32[128,8], index: 0, kind: input, shape index: {}]   ;;  %s5698_s1 = inlined_call_operand.vmem [shape: f32[4,64,1], index: 1, kind: input, shape index: {}]   ;;  %s5699_s2 = inlined_call_operand.vmem [shape: f32[4,64,32], index: 2, kind: input, shape index: {}]   ;;  %s5700_s3 = inlined_call_operand.vmem [shape: bf16[1,64], index: 3, kind: input, shape index: {}]   ;;  %s5701_s4 = inlined_call_operand.vmem [shape: bf16[64,1], index: 4, kind: input, shape index: {}]   ;;  %s5702_s5 = inlined_call_operand.vmem [shape: bf16[72,32], index: 5, kind: input, shape index: {}]   ;;  %s5703_s6 = inlined_call_operand.vmem [shape: f32[1,32], index: 6, kind: input, shape index: {}]   ;;  %s5704_s7 = inlined_call_operand.vmem [shape: bf16[2,288,32], index: 7, kind: input, shape index: {}]   ;;  %s5705_s8 = inlined_call_operand.vmem [shape: f32[2,1,32], index: 8, kind: input, shape index: {}]   ;;  %s5706_s9 = inlined_call_operand.vmem [shape: f32[2,1,32], index: 9, kind: input, shape index: {}]   ;;  %s5707_s10 = inlined_call_operand.vmem [shape: bf16[2,288,32], index: 10, kind: input, shape index: {}]   ;;  %s5708_s11 = inlined_call_operand.vmem [shape: f32[2,1,32], index: 11, kind: input, shape index: {}]   ;;  %s5709_s12 = inlined_call_operand.vmem [shape: f32[2,1,32], index: 12, kind: input, shape index: {}]   ;;  %s5710_s13 = inlined_call_operand.vmem [shape: bf16[2,32,4], index: 13, kind: input, shape index: {}]   ;;  %s5711_s14 = inlined_call_operand.vmem [shape: f32[2,1,4], index: 14, kind: input, shape index: {}]   ;;  %s5712_s15 = inlined_call_operand.vmem [shape: bf16[2,4,32], index: 15, kind: input, shape index: {}]   ;;  %s5713_s16 = inlined_call_operand.vmem [shape: f32[2,1,32], index: 16, kind: input, shape index: {}]   ;;  %s5714_s17 = inlined_call_operand.vmem [shape: bf16[32,320], index: 17, kind: input, shape index: {}]   ;;  %s5715_s18 = inlined_call_operand.vmem [shape: f32[1,320], index: 18, kind: input, shape index: {}]   ;;  %s5716_s19 = inlined_call_operand.vmem [shape: f32[2,1,320], index: 19, kind: output, shape index: {}]  }
   0x1   :  { %5741 = sst [smem:[#allocation19_spill]] %s5697_s0  ;;  %s4034_s0 = smov 0  }
   0x2   :  { %5742 = sst [smem:[#allocation20_spill]] %s5698_s1  ;;  %s4040_s21 = smov 0  }
   0x3   :  { %5743 = sst [smem:[#allocation21_spill]] %s5699_s2  ;;  %s4042_s1 = smov 0  }
   0x4   :  { %5744 = sst [smem:[#allocation22_spill]] %s5700_s3 }
   0x5   :  { %5745 = sst [smem:[#allocation23_spill]] %s5701_s4 }
   0x6   :  { %5746 = sst [smem:[#allocation24_spill]] %s5702_s5 }
   0x7   :  { %5747 = sst [smem:[#allocation25_spill]] %s5703_s6 }
   0x8   :  { %5748 = sst [smem:[#allocation26_spill]] %s5704_s7 }
   0x9   :  { %5749 = sst [smem:[#allocation27_spill]] %s5714_s17 }
   0xa   :  { %5750 = sst [smem:[#allocation28_spill]] %s5715_s18 }
   0xb LB: > { %5751 = sst [smem:[#allocation3_spill]] %s3897_s0  ;;  %s38_s22 = sadd.s32 1, %s3905_s20  ;;  %s3913_s1 = sphi %s4042_s1, %s29_s1   ;;  %s3909_s21 = sphi %s4040_s21, %s5809_s21   ;;  %s3905_s20 = sphi %s4038_s20, %s5808_s20   ;;  %s3901_s30 = sphi %s4036_s30, %s5807_s30   ;;  %s3897_s0 = sphi %s4034_s0, %s5806_s0  }
   0xc   : > { %5752 = sst [smem:[#allocation4_spill]] %s3905_s20  ;;  %s41_s2 = sadd.s32 1, %s3909_s21 }
   0xd   : > { %5753 = sst [smem:[#allocation5_spill]] %s3909_s21  ;;  %p39_p0 = scmp.ge.s32.totalorder %s38_s22, 2 }
   0xe   : > { %5754 = sst [smem:[#allocation6_spill]] %s3913_s1  ;;  %p3365_p1 = scmp.ge.s32.totalorder %s3913_s1, 1 }
   0xf   : > { %p637_p2 = scmp.lt.s32.totalorder %s3913_s1, 5  ;;  %s5811_s22 = smov (%p39_p0, %s38_s22), 0 }
  0x10   : > { %5755 = sst [smem:[#allocation7_spill]] %s5811_s22  ;;  %s5813_s2 = smov (!%p39_p0, %s41_s2), %s3909_s21 }
  0x11   : > { %p638_p3 = pnand %p3365_p1, %p637_p2  ;;  %p43_p4 = scmp.ge.s32.totalorder %s5813_s2, 2 }
  0x13   : > { %s5815_s2 = smov (%p43_p4, %s5813_s2), 0  ;;  %641 = sbr.rel (%p638_p3) target bundleno = 2756 (0xac4), region = 96 }
  0x14   : > { %5756 = sst [smem:[#allocation8_spill]] %s5815_s2 }
  0x1a   : > { %s3366_s23 = sshll.u32 %s3901_s30, 3  ;;  %p735_p5 = scmp.lt.s32.totalorder %s3897_s0, 1 }
  0x1b   : > { %p730_p6 = scmp.lt.s32.totalorder %s3366_s23, 15  ;;  %p772_p7 = scmp.lt.s32.totalorder %s3901_s30, 1 }
  0x1c   : > { %s4072_s24 = scalar_select %p735_p5, %s3897_s0, 1 }
  0x1d   : > { %s5817_s23 = smov (!%p730_p6, %s3366_s23), 15  ;;  %s5757_s1 = sld [smem:[#allocation19_spill]] }
  0x1e   : > { %s3741_s25 = smul.u32 144, %s4072_s24  ;;  %s3367_s28 = sshll.u32 %s5817_s23, 3 }
  0x1f   : > { %s5758_s7 = sld [smem:[#allocation26_spill]]  ;;  %s756_s20 = scalar_lea.vmem %s5709_s12, %s4072_s24 }
  0x20   : > { %s4096_s3 = scalar_lea.vmem %s5707_s10, %s3741_s25  ;;  %s3506_s21 = sshll.u32 %s4072_s24, 4 }
  0x21   : > { %s4110_s4 = scalar_lea.vmem %s5710_s13, %s3506_s21  ;;  %s3372_s0 = sshll.u32 %s4072_s24, 1 }
  0x22   : > { %s4124_s22 = scalar_lea.vmem %s5712_s15, %s3372_s0  ;;  %s5819_s30 = smov (!%p772_p7, %s3901_s30), 1 }
  0x23   : > { %s4086_s18 = scalar_lea.vmem %s5757_s1, %s3367_s28  ;;  %s3742_s29 = smul.u32 3, %s5819_s30 }
  0x24   : > { %s5759_s27 = sld [smem:[#allocation3_spill]] }
  0x25   : > { %s4091_s6 = scalar_lea.vmem %s5758_s7, %s3741_s25  ;;  %s4132_s28 = scalar_lea.vmem %s5716_s19, %s3742_s29 }
  0x2a   : > { %p3373_p8 = scmp.ne.s32.totalorder %s5759_s27, 0 }
  0x2b   : > { %s5760_s7 = sld [smem:[#allocation20_spill]] (!%p3373_p8)  ;;  %v3915_v2 = vmov (!%p3373_p8), 0   ;;  %v4232_v33 = vld [vmem:[%s4086_s18 + $0x20] sm:$0xff] (!%p3373_p8)  ;;  %v4235_v34 = vld [vmem:[%s4086_s18 + $0x28] sm:$0xff] (!%p3373_p8)  ;;  %v4248_v39 = vld [vmem:[%s4086_s18 + $0x38] sm:$0xff] (!%p3373_p8)  ;;  %s3916_s30 = smov (!%p3373_p8), 32   ;;  %v842_v58 = vlaneseq (!%p3373_p8) }
  0x2c   : > { %780 = sbr.rel (%p3373_p8) target bundleno = 601 (0x259), region = 100  ;;  %3803 = vset.pattern.permute.xlu1 (!%p3373_p8), %v3915_v2  ;;  %3802 = vset.pattern.permute.xlu0 (!%p3373_p8), %v3915_v2  ;;  %v4238_v35 = vld [vmem:[%s4086_s18] sm:$0xff] (!%p3373_p8)  ;;  %v4241_v36 = vld [vmem:[%s4086_s18 + $0x8] sm:$0xff] (!%p3373_p8)  ;;  %v1048_v38 = vpack.c.bf16 (!%p3373_p8), %v4235_v34, %v4232_v33  ;;  %v4251_v40 = vld [vmem:[%s4086_s18 + $0x18] sm:$0xff] (!%p3373_p8)  ;;  %s3918_s2 = smov (!%p3373_p8), 24   ;;  %vm1344_vm2 = vcmask (!%p3373_p8), 1043456  }
  0x2d   : > { %v1046_v37 = vpack.c.bf16 (!%p3373_p8), %v4241_v36, %v4238_v35  ;;  %v4254_v41 = vld [vmem:[%s4086_s18 + $0x10] sm:$0xff] (!%p3373_p8)  ;;  %s3919_s0 = smov (!%p3373_p8), 40   ;;  %s5761_s29 = sld [smem:[#allocation24_spill]] (!%p3373_p8)  ;;  %vm1226_vm3 = vcmask (!%p3373_p8), 64512   ;;  %vm1239_vm4 = vcmask (!%p3373_p8), 130048   ;;  %vm1248_vm5 = vcmask (!%p3373_p8), 195584  }
  0x2e   : > { %v4257_v42 = vld [vmem:[%s4086_s18 + $0x30] sm:$0xff] (!%p3373_p8)  ;;  %v1047_v43 = vpack.c.bf16 (!%p3373_p8), %v4251_v40, %v4254_v41  ;;  %s3917_s18 = smov (!%p3373_p8), 8   ;;  %s3920_s21 = smov (!%p3373_p8), 56   ;;  %vm1257_vm6 = vcmask (!%p3373_p8), 261120   ;;  %vm1266_vm7 = vcmask (!%p3373_p8), 326656   ;;  %vm1275_vm8 = vcmask (!%p3373_p8), 392192  }
  0x2f   : > { %v1049_v44 = vpack.c.bf16 (!%p3373_p8), %v4248_v39, %v4257_v42  ;;  %s3922_s26 = smov (!%p3373_p8), 48   ;;  %s3923_s5 = smov (!%p3373_p8), 64   ;;  %vm1284_vm9 = vcmask (!%p3373_p8), 457728   ;;  %vm1293_vm10 = vcmask (!%p3373_p8), 523264   ;;  %vm1335_vm11 = vcmask (!%p3373_p8), 588800  }
  0x31   : > { %v3378_v0 = vld [vmem:[%s5760_s7 + $0x60] sm:$0xff] (!%p3373_p8)  ;;  %v3381_v3 = vld [vmem:[%s5760_s7 + $0x78] sm:$0xff] (!%p3373_p8)  ;;  %v3376_v5 = vld [vmem:[%s5760_s7 + $0x50] sm:$0xff] (!%p3373_p8) }
  0x32   : > { %v3374_v1 = vld [vmem:[%s5760_s7 + $0x40] sm:$0xff] (!%p3373_p8)  ;;  %940 = vperm.xlu1 (!%p3373_p8), %3803, %v3378_v0   ;;  %v3377_v4 = vld [vmem:[%s5760_s7 + $0x58] sm:$0xff] (!%p3373_p8)  ;;  %v3375_v6 = vld [vmem:[%s5760_s7 + $0x48] sm:$0xff] (!%p3373_p8)  ;;  %v4295_v0 = vshrl.u32 (!%p3373_p8), %v842_v58, 7 }
  0x33   : > { %920 = vperm.xlu0 %3802, %v3374_v1   ;;  %v3380_v7 = vld [vmem:[%s5760_s7 + $0x70] sm:$0xff]  ;;  %v3379_v8 = vld [vmem:[%s5760_s7 + $0x68] sm:$0xff]  ;;  %v3382_v10 = vld [vmem:[%s5760_s7 + $0x80] sm:$0xff] }
  0x34   : > { %v3383_v9 = vld [vmem:[%s5760_s7 + $0x88] sm:$0xff]  ;;  %v3386_v12 = vld [vmem:[%s5760_s7 + $0xa0] sm:$0xff]  ;;  %v3385_v13 = vld [vmem:[%s5760_s7 + $0x98] sm:$0xff]  ;;  %vm844_vm0 = vcmp.lt.s32.totalorder %v4295_v0, 1  ;;  %vm909_vm1 = vcmp.lt.s32.totalorder %v4295_v0, 7 }
  0x35   : > { %v3387_v11 = vld [vmem:[%s5760_s7 + $0xa8] sm:$0xff]  ;;  %v3384_v14 = vld [vmem:[%s5760_s7 + $0x90] sm:$0xff]  ;;  %v3389_v15 = vld [vmem:[%s5760_s7 + $0xb8] sm:$0xff] }
  0x36   : > { %955 = vperm.xlu1 %3803, %v3381_v3   ;;  %v3388_v16 = vld [vmem:[%s5760_s7 + $0xb0] sm:$0xff]  ;;  %v782_v17 = vld [vmem:[%s5760_s7 + $0x8] sm:$0xff]  ;;  %v781_v18 = vld [vmem:[%s5760_s7] sm:$0xff] }
  0x37   : > { %935 = vperm.xlu0 %3802, %v3377_v4   ;;  %v786_v19 = vld [vmem:[%s5760_s7 + $0x28] sm:$0xff]  ;;  %v785_v20 = vld [vmem:[%s5760_s7 + $0x20] sm:$0xff]  ;;  %v784_v21 = vld [vmem:[%s5760_s7 + $0x18] sm:$0xff] }
  0x38   : > { %v783_v22 = vld [vmem:[%s5760_s7 + $0x10] sm:$0xff]  ;;  %v788_v23 = vld [vmem:[%s5760_s7 + $0x38] sm:$0xff]  ;;  %v3391_v25 = vld [vmem:[%s5760_s7 + $0xc8] sm:$0xff] }
  0x39   : > { %v787_v24 = vld [vmem:[%s5760_s7 + $0x30] sm:$0xff]  ;;  %v3390_v26 = vld [vmem:[%s5760_s7 + $0xc0] sm:$0xff]  ;;  %v3395_v27 = vld [vmem:[%s5760_s7 + $0xe8] sm:$0xff] }
  0x3a   : > { %930 = vperm.xlu1 %3803, %v3376_v5   ;;  %v3394_v28 = vld [vmem:[%s5760_s7 + $0xe0] sm:$0xff]  ;;  %v3393_v29 = vld [vmem:[%s5760_s7 + $0xd8] sm:$0xff]  ;;  %v3392_v30 = vld [vmem:[%s5760_s7 + $0xd0] sm:$0xff]  ;;  %v834_v5 = vrot.slane %v4238_v35, 7 }
  0x3b   : > { %925 = vperm.xlu0 %3802, %v3375_v6   ;;  %v3397_v31 = vld [vmem:[%s5760_s7 + $0xf8] sm:$0xff]  ;;  %v3396_v32 = vld [vmem:[%s5760_s7 + $0xf0] sm:$0xff]  ;;  %v835_v6 = vrot.slane %v4241_v36, 7 }
  0x3e   : > { %950 = vperm.xlu1 %3803, %v3380_v7   ;;  %v841_v7 = vrot.slane %v4248_v39, 7 }
  0x3f   : > { %945 = vperm.xlu0 %3802, %v3379_v8  }
  0x42   : > { %973 = vperm.xlu1 %3803, %v3383_v9  }
  0x43   : > { %968 = vperm.xlu0 %3802, %v3382_v10  }
  0x46   : > { %993 = vperm.xlu1 %3803, %v3387_v11  }
  0x47   : > { %988 = vperm.xlu0 %3802, %v3386_v12  }
  0x4a   : > { %983 = vperm.xlu1 %3803, %v3385_v13   ;;  %v851_v13 = vsel %vm844_vm0, %v834_v5, %v835_v6 }
  0x4b   : > { %978 = vperm.xlu0 %3802, %v3384_v14   ;;  %v852_v14 = vsel %vm844_vm0, %v841_v7, %v834_v5 }
  0x4e   : > { %1003 = vperm.xlu1 %3803, %v3389_v15   ;;  %v838_v15 = vrot.slane %v4232_v33, 7 }
  0x4f   : > { %998 = vperm.xlu0 %3802, %v3388_v16   ;;  %v839_v16 = vrot.slane %v4235_v34, 7 }
  0x52   : > { %860 = vperm.xlu1 %3803, %v782_v17   ;;  %v837_v17 = vrot.slane %v4251_v40, 7 }
  0x53   : > { %855 = vperm.xlu0 %3802, %v781_v18  }
  0x56   : > { %880 = vperm.xlu1 %3803, %v786_v19  }
  0x57   : > { %875 = vperm.xlu0 %3802, %v785_v20  }
  0x5a   : > { %870 = vperm.xlu1 %3803, %v784_v21  }
  0x5b   : > { %865 = vperm.xlu0 %3802, %v783_v22  }
  0x5e   : > { %890 = vperm.xlu1 %3803, %v788_v23   ;;  %v847_v23 = vsel %vm844_vm0, %v838_v15, %v839_v16 }
  0x5f   : > { %885 = vperm.xlu0 %3802, %v787_v24   ;;  %v848_v24 = vsel %vm844_vm0, %v837_v17, %v838_v15 }
  0x62   : > { %1061 = vperm.xlu1 %3803, %v3391_v25   ;;  %v836_v25 = vrot.slane %v4254_v41, 7 }
  0x63   : > { %1056 = vperm.xlu0 %3802, %v3390_v26  }
  0x66   : > { %1081 = vperm.xlu1 %3803, %v3395_v27  }
  0x67   : > { %1076 = vperm.xlu0 %3802, %v3394_v28  }
  0x6a   : > { %1071 = vperm.xlu1 %3803, %v3393_v29   ;;  %v903_v29 = vrot.slane %v4254_v41, 1 }
  0x6b   : > { %1066 = vperm.xlu0 %3802, %v3392_v30  }
  0x6e   : > { %1091 = vperm.xlu1 %3803, %v3397_v31  }
  0x6f   : > { %1086 = vperm.xlu0 %3802, %v3396_v32   ;;  %v901_v32 = vrot.slane %v4238_v35, 1 }
  0x72   : > { %1174 = vrot.lane.b32.xlu1 %v1048_v38, %s3916_s30 }
  0x73   : > { %1170 = vrot.lane.b32.xlu0 %v1046_v37, %s3916_s30  ;;  %v902_v37 = vrot.slane %v4241_v36, 1 }
  0x76   : > { %1176 = vrot.lane.b32.xlu1 %v1049_v44, %s3916_s30  ;;  %v849_v44 = vsel %vm844_vm0, %v836_v25, %v837_v17 }
  0x77   : > { %1172 = vrot.lane.b32.xlu0 %v1047_v43, %s3916_s30 }
  0xb1   : > { %v4263_v45 = vpop.permute.xlu1 %940 }
  0xb2   : > { %v4265_v46 = vpop.permute.xlu0 %920 }
  0xb5   : > { %v4267_v47 = vpop.permute.xlu1 %955 }
  0xb6   : > { %v4269_v48 = vpop.permute.xlu0 %935 }
  0xb9   : > { %v4271_v49 = vpop.permute.xlu1 %930 }
  0xba   : > { %v4273_v50 = vpop.permute.xlu0 %925 }
  0xbd   : > { %v4275_v51 = vpop.permute.xlu1 %950 }
  0xbe   : > { %v4277_v52 = vpop.permute.xlu0 %945 }
  0xc1   : > { %v4279_v53 = vpop.permute.xlu1 %973 }
  0xc2   : > { %v4281_v54 = vpop.permute.xlu0 %968  ;;  %v1019_v55 = vmul.f32 %v4279_v53, %v4238_v35 }
  0xc3   : > { %v1018_v56 = vmul.f32 %v4281_v54, %v4248_v39 }
  0xc5   : > { %v1026_v57 = vpack.c.bf16 %v1019_v55, %v1018_v56  ;;  %v4287_v59 = vpop.permute.xlu1 %993  ;;  %v850_v55 = vsel %vm844_vm0, %v835_v6, %v836_v25  ;;  %v840_v56 = vrot.slane %v4257_v42, 7  ;;  %v905_v6 = vrot.slane %v4232_v33, 1 }
  0xc6   : > { %v4289_v60 = vpop.permute.xlu0 %988  ;;  %v1023_v61 = vmul.f32 %v4287_v59, %v4232_v33 }
  0xc7   : > { %v1022_v62 = vmul.f32 %v4289_v60, %v4251_v40  ;;  %1134 = vrot.lane.b32.xlu0 %v1026_v57, %s3917_s18  ;;  %v845_v15 = vsel %vm844_vm0, %v840_v56, %v841_v7  ;;  %v846_v17 = vsel %vm844_vm0, %v839_v16, %v840_v56 }
  0xc9   : > { %v1028_v63 = vpack.c.bf16 %v1023_v61, %v1022_v62  ;;  %v4297_v1 = vpop.permute.xlu1 %983  ;;  %v904_v62 = vrot.slane %v4251_v40, 1 }
  0xca   : > { %v4299_v2 = vpop.permute.xlu0 %978  ;;  %v1021_v3 = vmul.f32 %v4297_v1, %v4254_v41 }
  0xcb   : > { %v1020_v4 = vmul.f32 %v4299_v2, %v4241_v36  ;;  %1138 = vrot.lane.b32.xlu1 %v1028_v63, %s3917_s18  ;;  %v915_v63 = vsel %vm909_vm1, %v902_v37, %v903_v29 }
  0xcd   : > { %v1027_v8 = vpack.c.bf16 %v1021_v3, %v1020_v4  ;;  %v4309_v9 = vpop.permute.xlu1 %1003  ;;  %v907_v3 = vrot.slane %v4257_v42, 1 }
  0xce   : > { %v4311_v10 = vpop.permute.xlu0 %998  ;;  %v1025_v11 = vmul.f32 %v4309_v9, %v4257_v42 }
  0xcf   : > { %v1024_v12 = vmul.f32 %v4311_v10, %v4235_v34  ;;  %1136 = vrot.lane.b32.xlu0 %v1027_v8, %s3917_s18  ;;  %v916_v8 = vsel %vm909_vm1, %v901_v32, %v902_v37  ;;  %v913_v37 = vsel %vm909_vm1, %v904_v62, %v905_v6 }
  0xd1   : > { %v1029_v18 = vpack.c.bf16 %v1025_v11, %v1024_v12  ;;  %v861_v19 = vpop.permute.xlu1 %860 }
  0xd2   : > { %v856_v20 = vpop.permute.xlu0 %855  ;;  %v4324_v21 = vmul.f32 %v861_v19, %v851_v13  ;;  %v906_v13 = vrot.slane %v4235_v34, 1 }
  0xd3   : > { %v4326_v22 = vmul.f32 %v856_v20, %v852_v14  ;;  %1140 = vrot.lane.b32.xlu1 %v1029_v18, %s3917_s18  ;;  %v914_v14 = vsel %vm909_vm1, %v903_v29, %v904_v62  ;;  %v4387_v18 = vmul.f32 %v4273_v50, %v915_v63  ;;  %s3921_s18 = smov 16  }
  0xd4   : > { %v4335_v26 = vmul.f32 %v4299_v2, %v4324_v21  ;;  %v911_v7 = vsel %vm909_vm1, %v906_v13, %v907_v3 }
  0xd5   : > { %v4339_v27 = vmul.f32 %v4279_v53, %v4326_v22  ;;  %v1042_v28 = vpack.c.bf16 %v4324_v21, %v4326_v22  ;;  %v881_v30 = vpop.permute.xlu1 %880 }
  0xd6   : > { %v876_v31 = vpop.permute.xlu0 %875  ;;  %v4346_v38 = vmul.f32 %v881_v30, %v847_v23 }
  0xd7   : > { %v4348_v43 = vmul.f32 %v876_v31, %v848_v24  ;;  %1158 = vrot.lane.b32.xlu0 %v1042_v28, %s3918_s2  ;;  %v4400_v24 = vmul.f32 %v4265_v46, %v916_v8  ;;  %v912_v46 = vsel %vm909_vm1, %v905_v6, %v906_v13  ;;  %v908_v31 = vrot.slane %v4248_v39, 1 }
  0xd8   : > { %v4359_v57 = vmul.f32 %v4311_v10, %v4346_v38  ;;  %v4447_v8 = vmul.f32 %v4263_v45, %v912_v46  ;;  %v3805_v46 = vld [vmem:[%s5761_s29 + $0x8] sm:$0xff]  }
  0xd9   : > { %v4363_v58 = vmul.f32 %v4287_v59, %v4348_v43  ;;  %v1044_v61 = vpack.c.bf16 %v4346_v38, %v4348_v43  ;;  %v871_v4 = vpop.permute.xlu1 %870  ;;  %v910_v6 = vsel %vm909_vm1, %v907_v3, %v908_v31 }
  0xda   : > { %v866_v5 = vpop.permute.xlu0 %865  ;;  %v4374_v11 = vmul.f32 %v871_v4, %v849_v44  ;;  %v4419_v44 = vmul.f32 %v4271_v49, %v914_v14  ;;  %v4434_v4 = vmul.f32 %v4277_v52, %v911_v7 }
  0xdb   : > { %v4376_v12 = vmul.f32 %v866_v5, %v850_v55  ;;  %1162 = vrot.lane.b32.xlu1 %v1044_v61, %s3918_s2  ;;  %v1050_v61 = vpack.c.bf16 %v4387_v18, %v4400_v24  ;;  %v4441_v5 = vmul.f32 %v4269_v48, %v913_v37  ;;  %v917_v48 = vsel %vm909_vm1, %v908_v31, %v901_v32 }
  0xdc   : > { %v4391_v19 = vmul.f32 %v4289_v60, %v4374_v11  ;;  %v1052_v0 = vpack.c.bf16 %v4434_v4, %v4447_v8 }
  0xdd   : > { %v4395_v20 = vmul.f32 %v4297_v1, %v4376_v12  ;;  %v1043_v23 = vpack.c.bf16 %v4374_v11, %v4376_v12  ;;  %v891_v16 = vpop.permute.xlu1 %890  ;;  %v1051_v45 = vpack.c.bf16 %v4441_v5, %v4419_v44 }
  0xde   : > { %v886_v50 = vpop.permute.xlu0 %885  ;;  %v4404_v25 = vmul.f32 %v891_v16, %v845_v15  ;;  %v1016_v29 = vpack.c.bf16 %v4363_v58, %v4391_v19  ;;  %v4463_v15 = vmul.f32 %v4275_v51, %v910_v6 }
  0xdf   : > { %v4406_v28 = vmul.f32 %v886_v50, %v846_v17  ;;  %1160 = vrot.lane.b32.xlu0 %v1043_v23, %s3918_s2  ;;  %v1015_v30 = vpack.c.bf16 %v4395_v20, %v4335_v26 }
  0xe0   : > { %v4423_v55 = vmul.f32 %v4281_v54, %v4404_v25 }
  0xe1   : > { %v4427_v56 = vmul.f32 %v4309_v9, %v4406_v28  ;;  %v1045_v63 = vpack.c.bf16 %v4404_v25, %v4406_v28  ;;  %v4436_v62 = vpop.permute.xlu1 %1061 }
  0xe2   : > { %v4438_v49 = vpop.permute.xlu0 %1056  ;;  %v1014_v52 = vpack.c.bf16 %v4339_v27, %v4423_v55  ;;  %v1107_v3 = vmul.f32 %v4436_v62, %v4254_v41  ;;  %v3804_v41 = vld [vmem:[%s5761_s29] sm:$0xff]  }
  0xe3   : > { %1182 = vrot.lane.b32.xlu0 %v1050_v61, %s3919_s0  ;;  %1164 = vrot.lane.b32.xlu1 %v1045_v63, %s3918_s2  ;;  %v1017_v13 = vpack.c.bf16 %v4427_v56, %v4359_v57  ;;  %v1106_v14 = vmul.f32 %v4438_v49, %v4241_v36  ;;  %v4476_v36 = vmul.f32 %v4267_v47, %v917_v48 }
  0xe4   : > { %3631 = vmatprep.subr.bf16.mxu0 %v3804_v41  ;;  %3729 = vmatprep.subr.bf16.mxu1 %v3804_v41 }
  0xe5   : > { %v4465_v17 = vpop.permute.xlu1 %1081  ;;  %v1114_v51 = vpack.c.bf16 %v1107_v3, %v1106_v14  ;;  %3632 = vmatpush3.bf16.msra.mxu0 %v3804_v41  ;;  %v1053_v47 = vpack.c.bf16 %v4476_v36, %v4463_v15  ;;  %3734 = vmatpush3.bf16.msra.mxu1 %v3804_v41  ;;  %v1030_v37 = vmul.f32 %v4281_v54, %v4476_v36 }
  0xe6   : > { %v4467_v23 = vpop.permute.xlu0 %1076  ;;  %v1111_v32 = vmul.f32 %v4465_v17, %v4257_v42  ;;  %3633 = vmatprep.subr.bf16.mxu0 %v3805_v46  ;;  %v1031_v42 = vmul.f32 %v4279_v53, %v4400_v24  ;;  %3730 = vmatprep.subr.bf16.mxu1 %v3805_v46  ;;  %v1035_v54 = vmul.f32 %v4287_v59, %v4447_v8 }
  0xe7   : > { %1184 = vrot.lane.b32.xlu0 %v1051_v45, %s3919_s0  ;;  %1186 = vrot.lane.b32.xlu1 %v1052_v0, %s3919_s0  ;;  %v1110_v7 = vmul.f32 %v4467_v23, %v4235_v34  ;;  %v1034_v3 = vmul.f32 %v4289_v60, %v4441_v5  ;;  %v1033_v45 = vmul.f32 %v4297_v1, %v4419_v44  ;;  %v3807_v0 = vld [vmem:[%s5761_s29 + $0x18] sm:$0xff]  }
  0xe8   : > { %v1038_v14 = vpack.c.bf16 %v1031_v42, %v1030_v37  ;;  %v1037_v59 = vmul.f32 %v4309_v9, %v4463_v15  ;;  %v1036_v60 = vmul.f32 %v4311_v10, %v4434_v4  ;;  %v1095_v1 = vmul.f32 %v4436_v62, %v4376_v12  ;;  %v3808_v9 = vld [vmem:[%s5761_s29 + $0x20] ss:$0 sps:$4 sm:$0xff]  }
  0xe9   : > { %v4483_v16 = vpop.permute.xlu1 %1071  ;;  %3634 = vmatpush3.bf16.msra.mxu0 %v3805_v46  ;;  %v1116_v63 = vpack.c.bf16 %v1111_v32, %v1110_v7  ;;  %3735 = vmatpush3.bf16.msra.mxu1 %v3805_v46  ;;  %v1346_v10 = vsel %vm1344_vm2, %v3808_v9, 0  ;;  %v1099_v12 = vmul.f32 %v4465_v17, %v4406_v28  ;;  %v1119_v28 = vmul.f32 %v4436_v62, %v4419_v44 }
  0xea   : > { %v4485_v50 = vpop.permute.xlu0 %1066  ;;  %v1109_v31 = vmul.f32 %v4483_v16, %v4232_v33  ;;  %v1041_v7 = vpack.c.bf16 %v1037_v59, %v1036_v60  ;;  %v1122_v44 = vmul.f32 %v4467_v23, %v4434_v4 }
  0xeb   : > { %1206 = vrot.lane.b32.xlu0 %v1114_v51, %s3920_s21  ;;  %v1108_v34 = vmul.f32 %v4485_v50, %v4251_v40  ;;  %1188 = vrot.lane.b32.xlu1 %v1053_v47, %s3919_s0  ;;  %v3806_v40 = vld [vmem:[%s5761_s29 + $0x10] sm:$0xff]   ;;  %v1040_v51 = vpack.c.bf16 %v1035_v54, %v1034_v3  ;;  %v1097_v47 = vmul.f32 %v4483_v16, %v4348_v43 }
  0xec   : > { %3635 = vmatprep.subr.bf16.mxu0 %v3806_v40  ;;  %3731 = vmatprep.subr.bf16.mxu1 %v3806_v40  ;;  %v1096_v46 = vmul.f32 %v4485_v50, %v4374_v11  ;;  %v1123_v11 = vmul.f32 %v4465_v17, %v4463_v15 }
  0xed   : > { %v4502_v61 = vpop.permute.xlu1 %1091  ;;  %v1115_v6 = vpack.c.bf16 %v1109_v31, %v1108_v34  ;;  %3636 = vmatpush3.bf16.msra.mxu0 %v3806_v40  ;;  %3736 = vmatpush3.bf16.msra.mxu1 %v3806_v40  ;;  %v1118_v31 = vmul.f32 %v4438_v49, %v4387_v18 }
  0xee   : > { %v4504_v33 = vpop.permute.xlu0 %1086  ;;  %v1113_v48 = vmul.f32 %v4502_v61, %v4238_v35  ;;  %v1032_v35 = vmul.f32 %v4299_v2, %v4387_v18  ;;  %v1094_v2 = vmul.f32 %v4438_v49, %v4324_v21  ;;  %3637 = vmatprep.subr.bf16.mxu0 %v3807_v0  ;;  %3732 = vmatprep.subr.bf16.mxu1 %v3807_v0 }
  0xef   : > { %v1112_v53 = vmul.f32 %v4504_v33, %v4248_v39  ;;  %1210 = vrot.lane.b32.xlu1 %v1116_v63, %s3920_s21  ;;  %1208 = vrot.lane.b32.xlu0 %v1115_v6, %s3920_s21  ;;  %v1098_v21 = vmul.f32 %v4467_v23, %v4346_v38  ;;  %v1101_v38 = vmul.f32 %v4502_v61, %v4326_v22 }
  0xf0   : > { %v1039_v41 = vpack.c.bf16 %v1033_v45, %v1032_v35  ;;  %v1102_v32 = vpack.c.bf16 %v1095_v1, %v1094_v2  ;;  %v1100_v43 = vmul.f32 %v4504_v33, %v4404_v25  ;;  %v1103_v34 = vpack.c.bf16 %v1097_v47, %v1096_v46 }
  0xf1   : > { %v1117_v39 = vpack.c.bf16 %v1113_v48, %v1112_v53  ;;  %3638 = vmatpush3.bf16.msra.mxu0 %v3807_v0  ;;  %3737 = vmatpush3.bf16.msra.mxu1 %v3807_v0  ;;  %v1104_v42 = vpack.c.bf16 %v1099_v12, %v1098_v21  ;;  %v1126_v37 = vpack.c.bf16 %v1119_v28, %v1118_v31  ;;  %v1175_v23 = vpop.permute.xlu1 %1174 }
  0xf2   : > { %3739 = vmatprep.subr.msk.bf16.mxu0 %vm1344_vm2, %v3808_v9  ;;  %3740 = vmatprep.subr.msk.bf16.mxu1 %vm1344_vm2, %v3808_v9  ;;  %v1121_v18 = vmul.f32 %v4483_v16, %v4447_v8  ;;  %v1120_v22 = vmul.f32 %v4485_v50, %v4441_v5  ;;  %v1105_v62 = vpack.c.bf16 %v1101_v38, %v1100_v43  ;;  %v1171_v8 = vpop.permute.xlu0 %1170 }
  0xf3   : > { %1146 = vrot.lane.b32.xlu0 %v1038_v14, %s3921_s18  ;;  %1212 = vrot.lane.b32.xlu1 %v1117_v39, %s3920_s21  ;;  %v1125_v25 = vmul.f32 %v4502_v61, %v4400_v24  ;;  %v1124_v49 = vmul.f32 %v4504_v33, %v4476_v36  ;;  %v1128_v17 = vpack.c.bf16 %v1123_v11, %v1122_v44  ;;  %s5762_s21 = sld [smem:[#allocation25_spill]] }
  0xf4   : > { %v1127_v15 = vpack.c.bf16 %v1121_v18, %v1120_v22 }
  0xf5   : > { %3640 = vmatpush3.bf16.msra.mxu0 %v1346_v10  ;;  %3738 = vmatpush3.bf16.msra.mxu1 %v1346_v10  ;;  %v1129_v4 = vpack.c.bf16 %v1125_v25, %v1124_v49  ;;  %v1177_v5 = vpop.permute.xlu1 %1176 }
  0xf6   : > { %v1173_v16 = vpop.permute.xlu0 %1172 }
  0xf7   : > { %1148 = vrot.lane.b32.xlu0 %v1039_v41, %s3921_s18  ;;  %1150 = vrot.lane.b32.xlu1 %v1040_v51, %s3921_s18 }
  0xfb   : > { %1194 = vrot.lane.b32.xlu0 %v1102_v32, %s3922_s26  ;;  %1152 = vrot.lane.b32.xlu1 %v1041_v7, %s3921_s18 }
  0xff   : > { %1196 = vrot.lane.b32.xlu0 %v1103_v34, %s3922_s26  ;;  %1198 = vrot.lane.b32.xlu1 %v1104_v42, %s3922_s26 }
 0x103   : > { %1218 = vrot.lane.b32.xlu0 %v1126_v37, %s3923_s5  ;;  %1200 = vrot.lane.b32.xlu1 %v1105_v62, %s3922_s26 }
 0x107   : > { %1220 = vrot.lane.b32.xlu0 %v1127_v15, %s3923_s5  ;;  %1222 = vrot.lane.b32.xlu1 %v1128_v17, %s3923_s5 }
 0x10b   : > { %1224 = vrot.lane.b32.xlu1 %v1129_v4, %s3923_s5 }
 0x139   : > { %v1135_v50 = vpop.permute.xlu0 %1134 }
 0x13a   : > { %v1229_v59 = vsel %vm1226_vm3, %v1014_v52, %v1135_v50 }
 0x13d   : > { %v1139_v6 = vpop.permute.xlu1 %1138 }
 0x13e   : > { %v1235_v41 = vsel %vm1226_vm3, %v1016_v29, %v1139_v6 }
 0x141   : > { %v1137_v63 = vpop.permute.xlu0 %1136 }
 0x142   : > { %v1232_v51 = vsel %vm1226_vm3, %v1015_v30, %v1137_v63 }
 0x145   : > { %v1141_v48 = vpop.permute.xlu1 %1140 }
 0x146   : > { %v1238_v58 = vsel %vm1226_vm3, %v1017_v13, %v1141_v48 }
 0x149   : > { %v1159_v40 = vpop.permute.xlu0 %1158 }
 0x14d   : > { %v1163_v24 = vpop.permute.xlu1 %1162 }
 0x151   : > { %v1161_v53 = vpop.permute.xlu0 %1160 }
 0x155   : > { %v1183_v61 = vpop.permute.xlu0 %1182  ;;  %v1165_v54 = vpop.permute.xlu1 %1164 }
 0x159   : > { %v1185_v36 = vpop.permute.xlu0 %1184  ;;  %v1187_v33 = vpop.permute.xlu1 %1186 }
 0x15d   : > { %v1207_v3 = vpop.permute.xlu0 %1206  ;;  %v1189_v14 = vpop.permute.xlu1 %1188 }
 0x161   : > { %v1211_v45 = vpop.permute.xlu1 %1210  ;;  %v1209_v35 = vpop.permute.xlu0 %1208 }
 0x165   : > { %v1213_v39 = vpop.permute.xlu1 %1212  ;;  %v1147_v0 = vpop.permute.xlu0 %1146 }
 0x166   : > { %v1241_v60 = vsel %vm1239_vm4, %v1229_v59, %v1147_v0 }
 0x167   : > { %v1250_v9 = vsel %vm1248_vm5, %v1241_v60, %v1159_v40 }
 0x168   : > { %v1259_v12 = vsel %vm1257_vm6, %v1250_v9, %v1171_v8  ;;  %v3398_v8 = vld [vmem:[%s5762_s21] ss:$0 sm:$0xff] }
 0x169   : > { %v1151_v1 = vpop.permute.xlu1 %1150  ;;  %v1149_v2 = vpop.permute.xlu0 %1148  ;;  %v1268_v29 = vsel %vm1266_vm7, %v1259_v12, %v1183_v61 }
 0x16a   : > { %v1245_v27 = vsel %vm1239_vm4, %v1235_v41, %v1151_v1  ;;  %v1243_v55 = vsel %vm1239_vm4, %v1232_v51, %v1149_v2 }
 0x16b   : > { %v1254_v26 = vsel %vm1248_vm5, %v1245_v27, %v1163_v24  ;;  %v1252_v19 = vsel %vm1248_vm5, %v1243_v55, %v1161_v53 }
 0x16c   : > { %v1263_v21 = vsel %vm1257_vm6, %v1254_v26, %v1175_v23  ;;  %v1261_v47 = vsel %vm1257_vm6, %v1252_v19, %v1173_v16 }
 0x16d   : > { %v1153_v52 = vpop.permute.xlu1 %1152  ;;  %v1195_v10 = vpop.permute.xlu0 %1194  ;;  %v1272_v56 = vsel %vm1266_vm7, %v1263_v21, %v1187_v33  ;;  %v1270_v13 = vsel %vm1266_vm7, %v1261_v47, %v1185_v36 }
 0x16e   : > { %v1247_v20 = vsel %vm1239_vm4, %v1238_v58, %v1153_v52  ;;  %v1277_v7 = vsel %vm1275_vm8, %v1268_v29, %v1195_v10 }
 0x16f   : > { %v1256_v57 = vsel %vm1248_vm5, %v1247_v20, %v1165_v54  ;;  %v1286_v31 = vsel %vm1284_vm9, %v1277_v7, %v1207_v3 }
 0x170   : > { %v1265_v34 = vsel %vm1257_vm6, %v1256_v57, %v1177_v5 }
 0x171   : > { %v1199_v30 = vpop.permute.xlu1 %1198  ;;  %v1197_v32 = vpop.permute.xlu0 %1196  ;;  %v1274_v11 = vsel %vm1266_vm7, %v1265_v34, %v1189_v14 }
 0x172   : > { %v1281_v38 = vsel %vm1275_vm8, %v1272_v56, %v1199_v30  ;;  %v1279_v43 = vsel %vm1275_vm8, %v1270_v13, %v1197_v32 }
 0x173   : > { %v1288_v44 = vsel %vm1284_vm9, %v1279_v43, %v1209_v35  ;;  %v1290_v22 = vsel %vm1284_vm9, %v1281_v38, %v1211_v45 }
 0x175   : > { %v1201_v46 = vpop.permute.xlu1 %1200  ;;  %v1219_v28 = vpop.permute.xlu0 %1218 }
 0x176   : > { %v1295_v42 = vsel %vm1293_vm10, %v1286_v31, %v1219_v28  ;;  %v1283_v62 = vsel %vm1275_vm8, %v1274_v11, %v1201_v46 }
 0x177   : > { %3641 = vmatprep.mubr.msk.bf16.mxu0 %vm1335_vm11, %v1295_v42  ;;  %v1292_v15 = vsel %vm1284_vm9, %v1283_v62, %v1213_v39 }
 0x179   : > { %v1223_v37 = vpop.permute.xlu1 %1222  ;;  %v1221_v18 = vpop.permute.xlu0 %1220 }
 0x17a   : > { %v1297_v25 = vsel %vm1293_vm10, %v1288_v44, %v1221_v18  ;;  %v1299_v49 = vsel %vm1293_vm10, %v1290_v22, %v1223_v37 }
 0x17b   : > { %3642 = vmatmul.mubr.msk.bf16.vlgmr.msra.gmra.mrb[0].mxu0 %vm1335_vm11, %v1297_v25  ;;  %3645 = vmatprep.mubr.msk.bf16.mxu1 %vm1335_vm11, %v1299_v49 }
 0x17d   : > { %v1225_v17 = vpop.permute.xlu1 %1224 }
 0x17e   : > { %v1301_v4 = vsel %vm1293_vm10, %v1292_v15, %v1225_v17 }
 0x17f   : > { %3646 = vmatmul.mubr.msk.bf16.vlgmr.msra.gmra.mrb[0].mxu1 %vm1335_vm11, %v1301_v4 }
 0x24e   : > { %v3643_v23 = vpop.f32.mrb[0].mxu0 }
 0x24f   : > { %v1391_v16 = vadd.f32 %v3643_v23, %v3398_v8  ;;  %v1382_v5 = vpop.f32.mrb[1].mxu0 }
 0x250   : > { %v1383_v50 = vadd.f32 %v3398_v8, %v1382_v5  ;;  %v3644_v63 = vpop.f32.mrb[2].mxu0 }
 0x251   : > { %1415 = vst.msk [vmem:[#allocation2 + $0x10] sm:$0xff] %vm1257_vm6, %v1391_v16  ;;  %v1394_v6 = vadd.f32 %v3644_v63, %v3398_v8  ;;  %v1385_v40 = vpop.f32.mrb[3].mxu0 }
 0x252   : > { %1413 = vst.msk [vmem:[#allocation2] sm:$0xff] %vm1257_vm6, %v1383_v50  ;;  %v1386_v48 = vadd.f32 %v3398_v8, %v1385_v40  ;;  %v3647_v53 = vpop.f32.mrb[0].mxu1 }
 0x253   : > { %1416 = vst.msk [vmem:[#allocation2 + $0x18] sm:$0xff] %vm1257_vm6, %v1394_v6  ;;  %v1407_v24 = vadd.f32 %v3647_v53, %v3398_v8  ;;  %v1398_v61 = vpop.f32.mrb[1].mxu1 }
 0x254   : > { %1414 = vst.msk [vmem:[#allocation2 + $0x8] sm:$0xff] %vm1257_vm6, %v1386_v48  ;;  %v1399_v54 = vadd.f32 %v3398_v8, %v1398_v61  ;;  %v3648_v36 = vpop.f32.mrb[2].mxu1 }
 0x255   : > { %1419 = vst.msk [vmem:[#allocation2 + $0x30] sm:$0xff] %vm1257_vm6, %v1407_v24  ;;  %v1410_v33 = vadd.f32 %v3648_v36, %v3398_v8  ;;  %v1401_v3 = vpop.f32.mrb[3].mxu1 }
 0x256   : > { %1417 = vst.msk [vmem:[#allocation2 + $0x20] sm:$0xff] %vm1257_vm6, %v1399_v54  ;;  %v1402_v14 = vadd.f32 %v3398_v8, %v1401_v3 }
 0x257   : > { %1420 = vst.msk [vmem:[#allocation2 + $0x38] sm:$0xff] %vm1257_vm6, %v1410_v33 }
 0x258   : > { %1418 = vst.msk [vmem:[#allocation2 + $0x28] sm:$0xff] %vm1257_vm6, %v1402_v14 }
 0x259 PF: > { %s5763_s25 = sld [smem:[#allocation21_spill]]  ;;  %v4635_v39 = vld [vmem:[#allocation2] sm:$0xff]  ;;  %v5726_v0 = vlaneseq  ;;  %v4657_v55 = vld [vmem:[#allocation2 + $0x10] sm:$0xff]  ;;  %s3924_s1 = smov 32   ;;  %vm1710_vm14 = vcmask 261120   ;;  %vm1723_vm15 = vcmask 523264  }
 0x25a   : > { %v1502_v41 = vrot.slane %v4635_v39, 7  ;;  %v1529_v51 = vrot.slane %v4635_v39, 1  ;;  %v1531_v47 = vrot.slane %v4657_v55, 1  ;;  %v4711_v38 = vld [vmem:[#allocation2 + $0x18] sm:$0xff]  ;;  %v1504_v8 = vrot.slane %v4657_v55, 7  ;;  %s3925_s21 = smov 96   ;;  %s5778_s30 = scalar_lea.vmem %s5705_s8, %s4072_s24 }
 0x25b   : > { %v4655_v27 = vld [vmem:[#allocation2 + $0x8] sm:$0xff]  ;;  %v4661_v10 = vshrl.u32 %v5726_v0, 7  ;;  %v1532_v25 = vrot.slane %v4711_v38, 1  ;;  %v1505_v6 = vrot.slane %v4711_v38, 7  ;;  %s3926_s0 = smov 64   ;;  %vm1732_vm0 = vcmask 785408   ;;  %s5779_s26 = scalar_lea.vmem %s5706_s9, %s4072_s24 }
 0x25c   : > { %v1503_v29 = vrot.slane %v4655_v27, 7  ;;  %v1530_v32 = vrot.slane %v4655_v27, 1  ;;  %vm3928_vm1 = vmmov 0   ;;  %s5796_s23 = sld [smem:[#allocation22_spill]]  ;;  %vm2765_vm2 = vcmask 1041408   ;;  %s5797_s27 = scalar_lea.vmem %s5711_s14, %s4072_s24 }
 0x25d   : > { %vm1512_vm12 = vcmp.lt.s32.totalorder %v4661_v10, 1  ;;  %vm1537_vm13 = vcmp.lt.s32.totalorder %v4661_v10, 7  ;;  %v4713_v43 = vld [vmem:[#allocation2 + $0x20] sm:$0xff]  ;;  %vm2761_vm3 = vcmask 31744   ;;  %s5798_s17 = sld [smem:[#allocation23_spill]]  ;;  %vm2844_vm4 = vcmask 7168  }
 0x25e   : > { %v4637_v59 = vld [vmem:[#allocation2 + $0x38] sm:$0xff]  ;;  %v1519_v46 = vsel %vm1512_vm12, %v1502_v41, %v1503_v29  ;;  %v1544_v31 = vsel %vm1537_vm13, %v1529_v51, %v1530_v32  ;;  %v1543_v11 = vsel %vm1537_vm13, %v1530_v32, %v1531_v47  ;;  %v1533_v17 = vrot.slane %v4713_v43, 1  ;;  %s5800_s5 = sld [smem:[#allocation3_spill]] }
 0x25f   : > { %v4628_v45 = vld [vmem:[%s5763_s25 + $0x80] sm:$0xff]  ;;  %v4633_v35 = vld [vmem:[%s5763_s25 + $0x88] sm:$0xff]  ;;  %v5728_v52 = vrot.slane %v4637_v59, 7  ;;  %v5727_v12 = vrot.slane %v4637_v59, 1  ;;  %v4694_v57 = vld [vmem:[%s5763_s25 + $0x90] sm:$0xff]  ;;  %v1542_v50 = vsel %vm1537_vm13, %v1531_v47, %v1532_v25  ;;  %v1518_v24 = vsel %vm1512_vm12, %v1503_v29, %v1504_v8 }
 0x260   : > { %v1567_v60 = vmul.f32 %v4633_v35, %v4635_v39  ;;  %v4644_v1 = vld [vmem:[%s5763_s25 + $0xc0] sm:$0xff]  ;;  %v4649_v2 = vld [vmem:[%s5763_s25 + $0xc8] sm:$0xff]  ;;  %v1566_v9 = vmul.f32 %v4628_v45, %v4637_v59  ;;  %v4699_v56 = vld [vmem:[%s5763_s25 + $0x98] sm:$0xff]  ;;  %v1568_v18 = vmul.f32 %v4694_v57, %v4655_v27  ;;  %v1541_v48 = vsel %vm1537_vm13, %v1532_v25, %v1533_v17 }
 0x261   : > { %v1614_v58 = vmul.f32 %v4644_v1, %v4655_v27  ;;  %v1615_v26 = vmul.f32 %v4649_v2, %v4657_v55  ;;  %v1421_v19 = vld [vmem:[%s5763_s25] sm:$0xff]  ;;  %v4674_v20 = vld [vmem:[%s5763_s25 + $0x8] sm:$0xff]  ;;  %v1520_v28 = vsel %vm1512_vm12, %v5728_v52, %v1502_v41  ;;  %v1569_v22 = vmul.f32 %v4699_v56, %v4657_v55  ;;  %v4736_v62 = vld [vmem:[%s5763_s25 + $0x50] sm:$0xff] }
 0x262   : > { %v4680_v30 = vld [vmem:[%s5763_s25 + $0x40] sm:$0xff]  ;;  %v1574_v7 = vpack.c.bf16 %v1567_v60, %v1566_v9  ;;  %v4687_v21 = vld [vmem:[%s5763_s25 + $0x48] sm:$0xff]  ;;  %v4716_v34 = vmul.f32 %v1520_v28, %v1421_v19  ;;  %v4719_v42 = vmul.f32 %v1519_v46, %v4674_v20  ;;  %v4744_v15 = vld [vmem:[%s5763_s25 + $0x58] sm:$0xff]  ;;  %v4775_v53 = vmul.f32 %v4736_v62, %v1542_v50 }
 0x263   : > { %v1622_v13 = vpack.c.bf16 %v1615_v26, %v1614_v58  ;;  %v4724_v37 = vmul.f32 %v4680_v30, %v1544_v31  ;;  %v4727_v44 = vmul.f32 %v4687_v21, %v1543_v11  ;;  %5764 = vst [vmem:[#allocation9_spill] sm:$0xff] %v4744_v15  ;;  %v4750_v4 = vld [vmem:[%s5763_s25 + $0x10] sm:$0xff]  ;;  %v1575_v5 = vpack.c.bf16 %v1569_v22, %v1568_v18  ;;  %v4762_v63 = vld [vmem:[%s5763_s25 + $0x18] sm:$0xff]  ;;  %v4782_v61 = vld [vmem:[%s5763_s25 + $0x20] sm:$0xff] }
 0x264   : > { %1642 = vrot.lane.b32.xlu0 %v1574_v7, %s3924_s1  ;;  %v1590_v49 = vpack.c.bf16 %v4719_v42, %v4716_v34  ;;  %v1602_v23 = vmul.f32 %v4644_v1, %v4719_v42  ;;  %v3415_v40 = vld [vmem:[%s5763_s25 + $0x78] sm:$0xff]  ;;  %5765 = vst [vmem:[#allocation10_spill] sm:$0xff] %v4782_v61  ;;  %v1506_v54 = vrot.slane %v4713_v43, 7  ;;  %v4786_v36 = vmul.f32 %v4744_v15, %v1541_v48  ;;  %v4794_v3 = vld [vmem:[%s5763_s25 + $0xd0] sm:$0xff]  ;;  %v4816_v19 = vld [vmem:[#allocation2 + $0x28] sm:$0xff]  ;;  %p3494_p9 = scmp.ne.s32.totalorder %s5800_s5, 1 }
 0x265   : > { %v1598_v16 = vpack.c.bf16 %v4727_v44, %v4724_v37  ;;  %v4789_v33 = vmul.f32 %v1518_v24, %v4750_v4  ;;  %v1517_v14 = vsel %vm1512_vm12, %v1504_v8, %v1505_v6  ;;  %v1545_v60 = vsel %vm1537_vm13, %v5727_v12, %v1529_v51  ;;  %v4807_v41 = vld [vmem:[%s5763_s25 + $0xd8] sm:$0xff]  ;;  %v4825_v7 = vld [vmem:[#allocation2 + $0x30] sm:$0xff]  ;;  %v3809_v28 = vld [vmem:[%s4091_s6 + $0x40] sm:$0xff]   ;;  %s5802_s18 = sld [smem:[#allocation22_spill]] (!%p3494_p9) }
 0x266   : > { %1666 = vrot.lane.b32.xlu1 %v1590_v49, %s3925_s21  ;;  %v1516_v9 = vsel %vm1512_vm12, %v1505_v6, %v1506_v54  ;;  %v4812_v58 = vmul.f32 %v1517_v14, %v4762_v63  ;;  %v4814_v26 = vmul.f32 %v3415_v40, %v1545_v60  ;;  %v1579_v32 = vmul.f32 %v4633_v35, %v4724_v37  ;;  %v3810_v22 = vld [vmem:[%s4091_s6] sm:$0xff]   ;;  %v4844_v49 = vld [vmem:[%s5763_s25 + $0x28] sm:$0xff]  ;;  %v4849_v8 = vld [vmem:[%s5763_s25 + $0x30] sm:$0xff] }
 0x267   : > { %v1603_v29 = vmul.f32 %v4649_v2, %v4789_v33  ;;  %v4821_v51 = vmul.f32 %v1516_v9, %v4782_v61  ;;  %v1599_v47 = vpack.c.bf16 %v4786_v36, %v4775_v53  ;;  %v1534_v18 = vrot.slane %v4816_v19, 1  ;;  %5766 = vst [vmem:[#allocation11_spill] sm:$0xff] %v4844_v49  ;;  %5767 = vst [vmem:[#allocation12_spill] sm:$0xff] %v4849_v8  ;;  %v4863_v40 = vld [vmem:[%s5763_s25 + $0x60] sm:$0xff]  ;;  %v4868_v48 = vld [vmem:[%s5763_s25 + $0x68] sm:$0xff] }
 0x268   : > { %1702 = vrot.lane.b32.xlu0 %v1622_v13, %s3925_s21  ;;  %v1604_v13 = vmul.f32 %v4794_v3, %v4812_v58  ;;  %v1578_v46 = vmul.f32 %v4628_v45, %v4814_v26  ;;  %v1535_v25 = vrot.slane %v4825_v7, 1  ;;  %3516 = vmatprep.subr.bf16.mxu0 %v3809_v28  ;;  %v1580_v50 = vmul.f32 %v4694_v57, %v4727_v44  ;;  %v3812_v24 = vld [vmem:[%s4091_s6 + $0x8] sm:$0xff]   ;;  %v3814_v12 = vld [vmem:[%s4091_s6 + $0x10] sm:$0xff]   ;;  %v3823_v15 = vld [vmem:[%s4091_s6 + $0x80] sm:$0xff]  }
 0x269   : > { %v1610_v31 = vpack.c.bf16 %v1603_v29, %v1602_v23  ;;  %v1605_v11 = vmul.f32 %v4807_v41, %v4821_v51  ;;  %v3811_v23 = vld [vmem:[%s4091_s6 + $0x48] sm:$0xff]   ;;  %v1581_v6 = vmul.f32 %v4699_v56, %v4775_v53  ;;  %5768 = vst [vmem:[#allocation13_spill] sm:$0xff] %v4863_v40  ;;  %5769 = vst [vmem:[#allocation14_spill] sm:$0xff] %v4868_v48  ;;  %3517 = vmatpush3.bf16.msra.mxu0 %v3810_v22  ;;  %vm2857_vm5 = vcmask 1040384  }
 0x26a   : > { %1644 = vrot.lane.b32.xlu1 %v1575_v5, %s3924_s1  ;;  %v1617_v5 = vmul.f32 %v4807_v41, %v4713_v43  ;;  %v1586_v60 = vpack.c.bf16 %v1579_v32, %v1578_v46  ;;  %v1507_v9 = vrot.slane %v4816_v19, 7  ;;  %v1508_v29 = vrot.slane %v4825_v7, 7  ;;  %3518 = vmatprep.subr.bf16.mxu0 %v3811_v23  ;;  %v3813_v32 = vld [vmem:[%s4091_s6 + $0x50] sm:$0xff]   ;;  %v4895_v46 = vld [vmem:[%s5763_s25 + $0xe8] sm:$0xff] }
 0x26b   : > { %v1611_v14 = vpack.c.bf16 %v1605_v11, %v1604_v13  ;;  %v1539_v28 = vsel %vm1537_vm13, %v1534_v18, %v1535_v25  ;;  %v1540_v22 = vsel %vm1537_vm13, %v1533_v17, %v1534_v18  ;;  %v4890_v13 = vld [vmem:[%s5763_s25 + $0xe0] sm:$0xff]  ;;  %v4904_v11 = vld [vmem:[%s5763_s25 + $0xa8] sm:$0xff]  ;;  %v4981_v61 = vmul.f32 %v4699_v56, %v4789_v33  ;;  %3649 = vmatprep.subr.bf16.mxu1 %v3823_v15 }
 0x26c   : > { %1678 = vrot.lane.b32.xlu0 %v1598_v16, %s3924_s1  ;;  %v1616_v16 = vmul.f32 %v4794_v3, %v4711_v38  ;;  %5770 = vst [vmem:[#allocation15_spill] sm:$0xff] %v4890_v13  ;;  %v1514_v17 = vsel %vm1512_vm12, %v1507_v9, %v1508_v29  ;;  %5771 = vst [vmem:[#allocation16_spill] sm:$0xff] %v4904_v11  ;;  %v4917_v52 = vmul.f32 %v4868_v48, %v1539_v28  ;;  %vm3931_vm6 = vmmov (!%p3494_p9), 0  }
 0x26d   : > { %v4910_v0 = vmul.f32 %v1514_v17, %v4849_v8  ;;  %3519 = vmatpush3.bf16.msra.mxu0 %v3812_v24  ;;  %v1571_v28 = vmul.f32 %v4904_v11, %v4713_v43  ;;  %v1591_v17 = vpack.c.bf16 %v4812_v58, %v4789_v33  ;;  %3650 = vmatpush3.bf16.msra.mxu1 %v3823_v15  ;;  %v3821_v15 = vld [vmem:[%s4091_s6 + $0x70] sm:$0xff]  }
 0x26e   : > { %1690 = vrot.lane.b32.xlu1 %v1610_v31, %s3926_s0  ;;  %v1515_v31 = vsel %vm1512_vm12, %v1506_v54, %v1507_v9  ;;  %v1623_v18 = vpack.c.bf16 %v1617_v5, %v1616_v16  ;;  %v1587_v54 = vpack.c.bf16 %v1581_v6, %v1580_v50  ;;  %v1550_v9 = vmul.f32 %v4863_v40, %v1540_v22  ;;  %v4922_v16 = vld [vmem:[%s5763_s25 + $0x38] sm:$0xff] }
 0x26f   : > { %v4907_v23 = vmul.f32 %v1515_v31, %v4844_v49  ;;  %5772 = vst [vmem:[#allocation17_spill] sm:$0xff] %v4922_v16  ;;  %3520 = vmatprep.subr.bf16.mxu0 %v3813_v32  ;;  %v3815_v5 = vld [vmem:[%s4091_s6 + $0x58] sm:$0xff]   ;;  %v4949_v31 = vld [vmem:[%s5763_s25 + $0x70] sm:$0xff]  ;;  %v4974_v49 = vmul.f32 %v4694_v57, %v4719_v42 }
 0x270   : > { %1680 = vrot.lane.b32.xlu0 %v1599_v47, %s3924_s1  ;;  %v4884_v47 = vld [vmem:[%s5763_s25 + $0xa0] sm:$0xff]  ;;  %v3816_v32 = vld [vmem:[%s4091_s6 + $0x18] sm:$0xff]   ;;  %5774 = vst [vmem:[#allocation18_spill] sm:$0xff] %v4949_v31  ;;  %v1583_v48 = vmul.f32 %v4904_v11, %v1550_v9 }
 0x271   : > { %v1570_v24 = vmul.f32 %v4884_v47, %v4711_v38  ;;  %v1606_v6 = vmul.f32 %v4890_v13, %v4907_v23  ;;  %3521 = vmatpush3.bf16.msra.mxu0 %v3814_v12  ;;  %v1582_v8 = vmul.f32 %v4884_v47, %v4786_v36 }
 0x272   : > { %1654 = vrot.lane.b32.xlu1 %v1586_v60, %s3926_s0  ;;  %v1607_v60 = vmul.f32 %v4895_v46, %v4910_v0  ;;  %3522 = vmatprep.subr.bf16.mxu0 %v3815_v5 }
 0x273   : > { %v1576_v40 = vpack.c.bf16 %v1571_v28, %v1570_v24  ;;  %v1626_v24 = vmul.f32 %v4644_v1, %v4727_v44  ;;  %v1628_v28 = vmul.f32 %v4794_v3, %v4786_v36  ;;  %v5001_v44 = vld [vmem:[%s5763_s25 + $0xb0] sm:$0xff]  ;;  %v5015_v36 = vmul.f32 %v4904_v11, %v4821_v51 }
 0x274   : > { %1692 = vrot.lane.b32.xlu0 %v1611_v14, %s3926_s0  ;;  %v5773_v14 = vrot.slane %v4637_v59, 7  ;;  %v1612_v5 = vpack.c.bf16 %v1607_v60, %v1606_v6  ;;  %v1627_v6 = vmul.f32 %v4649_v2, %v4775_v53  ;;  %v3819_v60 = vld [vmem:[%s4091_s6 + $0x68] sm:$0xff]   ;;  %v5006_v53 = vld [vmem:[%s5763_s25 + $0xb8] sm:$0xff]  ;;  %v1588_v42 = vpack.c.bf16 %v1583_v48, %v1582_v8 }
 0x275   : > { %3523 = vmatpush3.bf16.msra.mxu0 %v3816_v32  ;;  %v1629_v32 = vmul.f32 %v4807_v41, %v1550_v9  ;;  %v1572_v48 = vmul.f32 %v5001_v44, %v4816_v19 }
 0x276   : > { %v1513_v50 = vsel %vm1512_vm12, %v1508_v29, %v5773_v14  ;;  %1656 = vrot.lane.b32.xlu1 %v1587_v54, %s3926_s0  ;;  %v1600_v29 = vpack.c.bf16 %v4917_v52, %v1550_v9  ;;  %v5775_v14 = vrot.slane %v4637_v59, 1  ;;  %v1619_v54 = vmul.f32 %v4895_v46, %v4825_v7  ;;  %v5020_v9 = vld [vmem:[%s5763_s25 + $0xf0] sm:$0xff] }
 0x277   : > { %v4938_v22 = vmul.f32 %v1513_v50, %v4922_v16  ;;  %v3817_v16 = vld [vmem:[%s4091_s6 + $0x60] sm:$0xff]   ;;  %v1635_v11 = vpack.c.bf16 %v1629_v32, %v1628_v28  ;;  %v3825_v32 = vld [vmem:[%s4091_s6 + $0x38] sm:$0xff]  }
 0x278   : > { %1704 = vrot.lane.b32.xlu0 %v1623_v18, %s3925_s21  ;;  %v1538_v12 = vsel %vm1537_vm13, %v1535_v25, %v5775_v14  ;;  %v1618_v18 = vmul.f32 %v4890_v13, %v4816_v19  ;;  %v4969_v25 = vmul.f32 %v4633_v35, %v4716_v34  ;;  %v3818_v14 = vld [vmem:[%s4091_s6 + $0x20] sm:$0xff]   ;;  %3524 = vmatprep.subr.bf16.mxu0 %v3817_v16  ;;  %v3820_v16 = vld [vmem:[%s4091_s6 + $0x28] sm:$0xff]  }
 0x279   : > { %v4961_v50 = vmul.f32 %v4628_v45, %v4938_v22  ;;  %v4977_v45 = vmul.f32 %v4949_v31, %v1538_v12  ;;  %v5025_v12 = vld [vmem:[%s5763_s25 + $0xf8] sm:$0xff]  ;;  %3525 = vmatpush3.bf16.msra.mxu0 %v3818_v14  ;;  %v3822_v14 = vld [vmem:[%s4091_s6 + $0x30] sm:$0xff]  }
 0x27a   : > { %1668 = vrot.lane.b32.xlu1 %v1591_v17, %s3925_s21  ;;  %v5011_v17 = vmul.f32 %v4884_v47, %v4812_v58  ;;  %v1630_v58 = vmul.f32 %v4890_v13, %v4917_v52  ;;  %v1624_v33 = vpack.c.bf16 %v1619_v54, %v1618_v18  ;;  %3526 = vmatprep.subr.bf16.mxu0 %v3819_v60  ;;  %v3824_v54 = vld [vmem:[%s4091_s6 + $0x78] sm:$0xff]  }
 0x27b   : > { %v5040_v13 = vmul.f32 %v5001_v44, %v4907_v23  ;;  %v1573_v18 = vmul.f32 %v5006_v53, %v4825_v7  ;;  %v1601_v28 = vpack.c.bf16 %v4814_v26, %v4977_v45 }
 0x27c   : > { %1682 = vrot.lane.b32.xlu0 %v1600_v29, %s3924_s1  ;;  %v1634_v29 = vpack.c.bf16 %v1627_v6, %v1626_v24  ;;  %v3826_v24 = vld [vmem:[%s4091_s6 + $0x88] sm:$0xff]   ;;  %v1631_v6 = vmul.f32 %v4895_v46, %v4977_v45  ;;  %v1564_v31 = vpack.c.bf16 %v5015_v36, %v5011_v17 }
 0x27d   : > { %3651 = vmatprep.subr.bf16.mxu1 %v3826_v24  ;;  %3527 = vmatpush3.bf16.msra.mxu0 %v3820_v16  ;;  %v1632_v16 = vmul.f32 %v5020_v9, %v4814_v26  ;;  %v1584_v26 = vmul.f32 %v5001_v44, %v4917_v52  ;;  %v1593_v52 = vpack.c.bf16 %v4938_v22, %v4910_v0 }
 0x27e   : > { %1646 = vrot.lane.b32.xlu1 %v1576_v40, %s3924_s1  ;;  %3652 = vmatpush3.bf16.msra.mxu1 %v3826_v24  ;;  %v1636_v8 = vpack.c.bf16 %v1631_v6, %v1630_v58  ;;  %v1592_v40 = vpack.c.bf16 %v4907_v23, %v4821_v51  ;;  %v1608_v51 = vmul.f32 %v5020_v9, %v4938_v22 }
 0x27f   : > { %3653 = vmatprep.mubr.msk.bf16.mxu1 %vm1710_vm14, %v1634_v29  ;;  %v1609_v23 = vmul.f32 %v5025_v12, %v4716_v34  ;;  %3528 = vmatprep.subr.bf16.mxu0 %v3821_v15  ;;  %v1620_v29 = vmul.f32 %v5020_v9, %v4637_v59  ;;  %v1621_v24 = vmul.f32 %v5025_v12, %v4635_v39 }
 0x280   : > { %1694 = vrot.lane.b32.xlu0 %v1612_v5, %s3926_s0  ;;  %v5044_v5 = vmul.f32 %v5006_v53, %v4910_v0 }
 0x281   : > { %3654 = vmatmul.mubr.msk.bf16.vlgmr.msra.gmra.mrb[0].mxu1 %vm1710_vm14, %v1635_v11  ;;  %3529 = vmatpush3.bf16.msra.mxu0 %v3822_v14  ;;  %v1613_v34 = vpack.c.bf16 %v1609_v23, %v1608_v51  ;;  %v1625_v15 = vpack.c.bf16 %v1621_v24, %v1620_v29  ;;  %v1595_v51 = vpack.c.bf16 %v4711_v38, %v4657_v55 }
 0x282   : > { %v1565_v60 = vpack.c.bf16 %v5044_v5, %v5040_v13  ;;  %1658 = vrot.lane.b32.xlu1 %v1588_v42, %s3926_s0  ;;  %3657 = vmatprep.mubr.msk.bf16.mxu1 %vm1710_vm14, %v1636_v8  ;;  %v1577_v42 = vpack.c.bf16 %v1573_v18, %v1572_v48  ;;  %v1594_v8 = vpack.c.bf16 %v4655_v27, %v4635_v39 }
 0x283   : > { %3530 = vmatprep.subr.bf16.mxu0 %v3824_v54  ;;  %v5776_v23 = vpack.c.bf16 %v4969_v25, %v4961_v50  ;;  %v5777_v50 = vpack.c.bf16 %v4981_v61, %v4974_v49 }
 0x284   : > { %1706 = vrot.lane.b32.xlu0 %v1624_v33, %s3925_s21  ;;  %v1633_v33 = vmul.f32 %v5025_v12, %v4724_v37  ;;  %v1585_v37 = vmul.f32 %v5006_v53, %v4977_v45 }
 0x285   : > { %3531 = vmatpush3.bf16.msra.mxu0 %v3825_v32 }
 0x286   : > { %1670 = vrot.lane.b32.xlu1 %v1592_v40, %s3925_s21  ;;  %v1637_v11 = vpack.c.bf16 %v1633_v33, %v1632_v16  ;;  %v1589_v58 = vpack.c.bf16 %v1585_v37, %v1584_v26 }
 0x288   : > { %1684 = vrot.lane.b32.xlu0 %v1601_v28, %s3924_s1 }
 0x289   : > { %3658 = vmatmul.mubr.msk.bf16.gmra.mrb[4].mxu1 %vm1710_vm14, %v1637_v11  ;;  %v1596_v11 = vpack.c.bf16 %v4816_v19, %v4713_v43 }
 0x28a   : > { %1648 = vrot.lane.b32.xlu1 %v1577_v42, %s3924_s1 }
 0x28c   : > { %1696 = vrot.lane.b32.xlu0 %v1613_v34, %s3926_s0 }
 0x28e   : > { %1660 = vrot.lane.b32.xlu1 %v1589_v58, %s3926_s0 }
 0x290   : > { %1708 = vrot.lane.b32.xlu0 %v1625_v15, %s3925_s21 }
 0x292   : > { %1672 = vrot.lane.b32.xlu1 %v1593_v52, %s3925_s21 }
 0x2d6   : > { %v1643_v45 = vpop.permute.xlu0 %1642 }
 0x2d7   : > { %v1713_v39 = vsel %vm1710_vm14, %v5776_v23, %v1643_v45 }
 0x2d8   : > { %v1667_v14 = vpop.permute.xlu1 %1666 }
 0x2da   : > { %v1703_v6 = vpop.permute.xlu0 %1702 }
 0x2dc   : > { %v1645_v48 = vpop.permute.xlu1 %1644 }
 0x2dd   : > { %v1716_v25 = vsel %vm1710_vm14, %v5777_v50, %v1645_v48  ;;  %v1597_v48 = vpack.c.bf16 %v4637_v59, %v4825_v7 }
 0x2de   : > { %v1679_v40 = vpop.permute.xlu0 %1678 }
 0x2df   : > { %v1747_v18 = vsel %vm1710_vm14, %v1594_v8, %v1679_v40 }
 0x2e0   : > { %v1691_v28 = vpop.permute.xlu1 %1690 }
 0x2e1   : > { %v1758_v0 = vsel %vm1723_vm15, %v1747_v18, %v1691_v28 }
 0x2e2   : > { %v1681_v54 = vpop.permute.xlu0 %1680  ;;  %v1766_v22 = vsel %vm1732_vm0, %v1758_v0, %v1703_v6 }
 0x2e3   : > { %1929 = vmatprep.mubr.bf16.mxu0 %v1766_v22  ;;  %v1750_v16 = vsel %vm1710_vm14, %v1595_v51, %v1681_v54 }
 0x2e4   : > { %v1655_v32 = vpop.permute.xlu1 %1654 }
 0x2e5   : > { %v1725_v33 = vsel %vm1723_vm15, %v1713_v39, %v1655_v32 }
 0x2e6   : > { %v1693_v27 = vpop.permute.xlu0 %1692  ;;  %v1734_v42 = vsel %vm1732_vm0, %v1725_v33, %v1667_v14  ;;  %v3827_v33 = vld [vmem:[%s4096_s3 + $0x80] sm:$0xff]  }
 0x2e7   : > { %1930 = vmatmul.mubr.bf16.vlgmr.msra.gmra.mrb[0].mxu0 %v1734_v42  ;;  %v1760_v55 = vsel %vm1723_vm15, %v1750_v16, %v1693_v27  ;;  %3661 = vmatprep.subr.bf16.mxu0 %v3827_v33 }
 0x2e8   : > { %v1657_v29 = vpop.permute.xlu1 %1656  ;;  %3662 = vmatpush3.bf16.msra.mxu0 %v3827_v33  ;;  %v3831_v33 = vld [vmem:[%s4096_s3 + $0x48] sm:$0xff]  }
 0x2e9   : > { %v1727_v34 = vsel %vm1723_vm15, %v1716_v25, %v1657_v29 }
 0x2ea   : > { %v1705_v38 = vpop.permute.xlu0 %1704 }
 0x2eb   : > { %v1769_v24 = vsel %vm1732_vm0, %v1760_v55, %v1705_v38 }
 0x2ec   : > { %1937 = vmatprep.mubr.bf16.mxu0 %v1769_v24  ;;  %v1669_v37 = vpop.permute.xlu1 %1668 }
 0x2ed   : > { %v1737_v15 = vsel %vm1732_vm0, %v1727_v34, %v1669_v37  ;;  %v5148_v34 = vld [vmem:[%s5778_s30] ss:$0 sm:$0xff] }
 0x2ee   : > { %v1683_v26 = vpop.permute.xlu0 %1682 }
 0x2ef   : > { %1938 = vmatmul.mubr.bf16.gmra.mrb[4].mxu0 %v1737_v15  ;;  %v1753_v45 = vsel %vm1710_vm14, %v1596_v11, %v1683_v26  ;;  %v5155_v11 = vld [vmem:[%s5779_s26] ss:$0 sm:$0xff] }
 0x2f0   : > { %v1647_v52 = vpop.permute.xlu1 %1646 }
 0x2f1   : > { %v1719_v8 = vsel %vm1710_vm14, %v1564_v31, %v1647_v52 }
 0x2f2   : > { %v1695_v58 = vpop.permute.xlu0 %1694 }
 0x2f3   : > { %v1762_v6 = vsel %vm1723_vm15, %v1753_v45, %v1695_v58 }
 0x2f4   : > { %v1659_v61 = vpop.permute.xlu1 %1658 }
 0x2f5   : > { %v1729_v43 = vsel %vm1723_vm15, %v1719_v8, %v1659_v61 }
 0x2f6   : > { %v1707_v14 = vpop.permute.xlu0 %1706 }
 0x2f7   : > { %v1772_v49 = vsel %vm1732_vm0, %v1762_v6, %v1707_v14 }
 0x2f8   : > { %1945 = vmatprep.mubr.bf16.mxu0 %v1772_v49  ;;  %v1671_v40 = vpop.permute.xlu1 %1670 }
 0x2f9   : > { %v1740_v18 = vsel %vm1732_vm0, %v1729_v43, %v1671_v40  ;;  %v3829_v40 = vld [vmem:[%s4096_s3 + $0x40] sm:$0xff]  }
 0x2fa   : > { %v1685_v19 = vpop.permute.xlu0 %1684  ;;  %1946 = vmatmul.mubr.bf16.gmra.mrb[8].mxu0 %v1740_v18  ;;  %3562 = vmatprep.subr.bf16.mxu1 %v3829_v40 }
 0x2fb   : > { %v1756_v51 = vsel %vm1710_vm14, %v1597_v48, %v1685_v19 }
 0x2fc   : > { %v1649_v28 = vpop.permute.xlu1 %1648 }
 0x2fd   : > { %v1722_v59 = vsel %vm1710_vm14, %v1565_v60, %v1649_v28  ;;  %v3828_v60 = vld [vmem:[%s4096_s3 + $0x88] sm:$0xff]  }
 0x2fe   : > { %v1697_v54 = vpop.permute.xlu0 %1696  ;;  %3663 = vmatprep.subr.bf16.mxu0 %v3828_v60 }
 0x2ff   : > { %v1764_v0 = vsel %vm1723_vm15, %v1756_v51, %v1697_v54  ;;  %3664 = vmatpush3.bf16.msra.mxu0 %v3828_v60 }
 0x300   : > { %v1661_v36 = vpop.permute.xlu1 %1660 }
 0x301   : > { %v1731_v7 = vsel %vm1723_vm15, %v1722_v59, %v1661_v36 }
 0x302   : > { %v1709_v17 = vpop.permute.xlu0 %1708 }
 0x303   : > { %v1775_v31 = vsel %vm1732_vm0, %v1764_v0, %v1709_v17 }
 0x304   : > { %1953 = vmatprep.mubr.bf16.mxu0 %v1775_v31  ;;  %v1673_v22 = vpop.permute.xlu1 %1672 }
 0x305   : > { %v1743_v23 = vsel %vm1732_vm0, %v1731_v7, %v1673_v22  ;;  %v3830_v7 = vld [vmem:[%s4096_s3] sm:$0xff]  }
 0x306   : > { %1954 = vmatmul.mubr.bf16.gmra.mrb[12].mxu0 %v1743_v23  ;;  %3563 = vmatpush3.bf16.msra.mxu1 %v3830_v7 }
 0x307   : > { %3564 = vmatprep.subr.bf16.mxu1 %v3831_v33 }
 0x354   : > { %v3655_v39 = vpop.f32.mrb[0].mxu1 }
 0x355   : > { %v1996_v27 = vpop.f32.mrb[1].mxu1 }
 0x356   : > { %v3656_v32 = vpop.f32.mrb[2].mxu1 }
 0x357   : > { %v1999_v16 = vpop.f32.mrb[3].mxu1 }
 0x35c   : > { %v5134_v42 = vpop.f32.mrb[4].mxu1 }
 0x35d   : > { %v5136_v13 = vpop.f32.mrb[5].mxu1 }
 0x35e   : > { %v5138_v5 = vpop.f32.mrb[6].mxu1 }
 0x35f   : > { %v5141_v55 = vpop.f32.mrb[7].mxu1 }
 0x3ba   : > { %v3532_v38 = vpop.f32.mrb[0].mxu0 }
 0x3bb   : > { %v3533_v29 = vpop.f32.mrb[1].mxu0 }
 0x3bc   : > { %v3534_v24 = vadd.f32 %v3533_v29, %v3532_v38  ;;  %v3535_v50 = vpop.f32.mrb[2].mxu0 }
 0x3bd   : > { %v3536_v25 = vpop.f32.mrb[3].mxu0 }
 0x3be   : > { %v3537_v26 = vadd.f32 %v3536_v25, %v3535_v50  ;;  %v1997_v37 = vadd.f32 %v3534_v24, %v1996_v27  ;;  %v3832_v50 = vld [vmem:[%s4096_s3 + $0x8] sm:$0xff]  }
 0x3bf   : > { %3565 = vmatpush3.bf16.msra.mxu1 %v3832_v50  ;;  %v3837_v50 = vld [vmem:[%s4096_s3 + $0x60] sm:$0xff]  }
 0x3c0   : > { %v2033_v15 = vmul.f32 %v5148_v34, %v1997_v37  ;;  %v2000_v58 = vadd.f32 %v3537_v26, %v1999_v16 }
 0x3c2   : > { %v2047_v52 = vadd.f32 %v5155_v11, %v2033_v15  ;;  %v2034_v45 = vmul.f32 %v5148_v34, %v2000_v58  ;;  %v3538_v6 = vpop.f32.mrb[4].mxu0 }
 0x3c3   : > { %v3539_v14 = vpop.f32.mrb[5].mxu0 }
 0x3c4   : > { %v5160_v61 = vmax.f32 %v2047_v52, 0.0  ;;  %v2048_v49 = vadd.f32 %v5155_v11, %v2034_v45  ;;  %v3540_v8 = vadd.f32 %v3539_v14, %v3538_v6  ;;  %v3541_v43 = vpop.f32.mrb[6].mxu0  ;;  %v3833_v14 = vld [vmem:[%s4096_s3 + $0x50] sm:$0xff]  }
 0x3c5   : > { %v3542_v19 = vpop.f32.mrb[7].mxu0  ;;  %3566 = vmatprep.subr.bf16.mxu1 %v3833_v14 }
 0x3c6   : > { %v5164_v48 = vmax.f32 %v2048_v49, 0.0  ;;  %v2005_v18 = vadd.f32 %v3655_v39, %v3540_v8  ;;  %v3543_v54 = vadd.f32 %v3542_v19, %v3541_v43  ;;  %v2125_v0 = vrot.slane %v5160_v61, 1 }
 0x3c7   : > { %v2101_v36 = vrot.slane %v5160_v61, 7 }
 0x3c8   : > { %v2035_v28 = vmul.f32 %v5148_v34, %v2005_v18  ;;  %v2008_v51 = vadd.f32 %v3656_v32, %v3543_v54  ;;  %v2126_v17 = vrot.slane %v5164_v48, 1  ;;  %v2102_v31 = vrot.slane %v5164_v48, 7  ;;  %v3834_v18 = vld [vmem:[%s4096_s3 + $0x10] sm:$0xff]   ;;  %v3835_v54 = vld [vmem:[%s4096_s3 + $0x58] sm:$0xff]  }
 0x3c9   : > { %v2209_v38 = vmul.f32 %v4644_v1, %v5164_v48  ;;  %v2163_v29 = vmul.f32 %v4694_v57, %v5164_v48  ;;  %3567 = vmatpush3.bf16.msra.mxu1 %v3834_v18  ;;  %v3838_v18 = vld [vmem:[%s4096_s3 + $0x20] sm:$0xff]  }
 0x3ca   : > { %v2049_v22 = vadd.f32 %v5155_v11, %v2035_v28  ;;  %v2036_v23 = vmul.f32 %v5148_v34, %v2008_v51  ;;  %v2139_v39 = vsel %vm1537_vm13, %v2125_v0, %v2126_v17  ;;  %v2115_v27 = vsel %vm1512_vm12, %v2101_v36, %v2102_v31  ;;  %3568 = vmatprep.subr.bf16.mxu1 %v3835_v54  ;;  %v3839_v54 = vld [vmem:[%s4096_s3 + $0x68] sm:$0xff]  }
 0x3cb   : > { %v5193_v24 = vmul.f32 %v2115_v27, %v4674_v20  ;;  %v5204_v20 = vmul.f32 %v4680_v30, %v2139_v39 }
 0x3cc   : > { %v5184_v32 = vmax.f32 %v2049_v22, 0.0  ;;  %v2050_v16 = vadd.f32 %v5155_v11, %v2036_v23 }
 0x3cd   : > { %v3544_v60 = vpop.f32.mrb[8].mxu0  ;;  %v5266_v14 = vmul.f32 %v4694_v57, %v5193_v24 }
 0x3ce   : > { %v5196_v25 = vmax.f32 %v2050_v16, 0.0  ;;  %v3545_v26 = vpop.f32.mrb[9].mxu0  ;;  %v2210_v37 = vmul.f32 %v4649_v2, %v5184_v32  ;;  %v2164_v15 = vmul.f32 %v4699_v56, %v5184_v32  ;;  %v2127_v58 = vrot.slane %v5184_v32, 1 }
 0x3cf   : > { %v3546_v52 = vadd.f32 %v3545_v26, %v3544_v60  ;;  %v3547_v45 = vpop.f32.mrb[10].mxu0  ;;  %v2103_v6 = vrot.slane %v5184_v32, 7 }
 0x3d0   : > { %v3548_v49 = vpop.f32.mrb[11].mxu0  ;;  %v2217_v8 = vpack.c.bf16 %v2210_v37, %v2209_v38  ;;  %v2170_v43 = vpack.c.bf16 %v2164_v15, %v2163_v29  ;;  %v2138_v19 = vsel %vm1537_vm13, %v2126_v17, %v2127_v58  ;;  %v2128_v40 = vrot.slane %v5196_v25, 1 }
 0x3d1   : > { %v3549_v28 = vadd.f32 %v3548_v49, %v3547_v45  ;;  %v2013_v51 = vadd.f32 %v3546_v52, %v5136_v13  ;;  %v2142_v30 = vmul.f32 %v4687_v21, %v2138_v19  ;;  %v2114_v7 = vsel %vm1512_vm12, %v2102_v31, %v2103_v6 }
 0x3d2   : > { %2297 = vrot.lane.b32.xlu0 %v2217_v8, %s3925_s21  ;;  %2239 = vrot.lane.b32.xlu1 %v2170_v43, %s3924_s1  ;;  %v2137_v17 = vsel %vm1537_vm13, %v2127_v58, %v2128_v40  ;;  %v5224_v22 = vmul.f32 %v2114_v7, %v4750_v4  ;;  %v2197_v13 = vmul.f32 %v4644_v1, %v5193_v24  ;;  %v2104_v21 = vrot.slane %v5196_v25, 7  ;;  %v5788_v7 = vld [vmem:[#allocation18_spill] sm:$0xff] }
 0x3d3   : > { %v2037_v31 = vmul.f32 %v5148_v34, %v2013_v51  ;;  %v2016_v23 = vadd.f32 %v3549_v28, %v5141_v55  ;;  %v2193_v39 = vpack.c.bf16 %v2142_v30, %v5204_v20  ;;  %v5233_v27 = vmul.f32 %v4736_v62, %v2137_v17 }
 0x3d4   : > { %v2221_v4 = vmul.f32 %v4644_v1, %v2142_v30  ;;  %v2175_v16 = vmul.f32 %v4694_v57, %v2142_v30  ;;  %v2198_v33 = vmul.f32 %v4649_v2, %v5224_v22  ;;  %v2113_v60 = vsel %vm1512_vm12, %v2103_v6, %v2104_v21  ;;  %v3836_v1 = vld [vmem:[%s4096_s3 + $0x18] sm:$0xff]  }
 0x3d5   : > { %v2051_v38 = vadd.f32 %v5155_v11, %v2037_v31  ;;  %v2038_v55 = vmul.f32 %v5148_v34, %v2016_v23  ;;  %v2222_v62 = vmul.f32 %v4649_v2, %v5233_v27  ;;  %v2176_v29 = vmul.f32 %v4699_v56, %v5233_v27  ;;  %3569 = vmatpush3.bf16.msra.mxu1 %v3836_v1 }
 0x3d6   : > { %2273 = vrot.lane.b32.xlu0 %v2193_v39, %s3924_s1  ;;  %v2205_v26 = vpack.c.bf16 %v2198_v33, %v2197_v13  ;;  %v5251_v37 = vmul.f32 %v2113_v60, %v4762_v63  ;;  %v5255_v15 = vmul.f32 %v4633_v35, %v5160_v61  ;;  %v2211_v6 = vmul.f32 %v4794_v3, %v5196_v25  ;;  %v5780_v33 = vld [vmem:[#allocation9_spill] sm:$0xff] }
 0x3d7   : > { %v5257_v58 = vmax.f32 %v2051_v38, 0.0  ;;  %v2052_v52 = vadd.f32 %v5155_v11, %v2038_v55  ;;  %v2229_v2 = vpack.c.bf16 %v2222_v62, %v2221_v4  ;;  %v2182_v45 = vpack.c.bf16 %v2176_v29, %v2175_v16  ;;  %3570 = vmatprep.subr.bf16.mxu1 %v3837_v50  ;;  %v3840_v4 = vld [vmem:[%s4096_s3 + $0x28] sm:$0xff]   ;;  %v5781_v62 = vld [vmem:[#allocation16_spill] sm:$0xff] }
 0x3d8   : > { %v2186_v63 = vpack.c.bf16 %v5251_v37, %v5224_v22  ;;  %v5270_v35 = vmul.f32 %v4699_v56, %v5224_v22  ;;  %v5285_v28 = vmul.f32 %v4794_v3, %v5251_v37  ;;  %v5289_v51 = vmul.f32 %v4884_v47, %v5196_v25 }
 0x3d9   : > { %v5272_v49 = vmax.f32 %v2052_v52, 0.0  ;;  %v3550_v8 = vpop.f32.mrb[12].mxu0  ;;  %3665 = vmatprep.mubr.msk.bf16.mxu0 %vm1710_vm14, %v2229_v2  ;;  %2251 = vrot.lane.b32.xlu1 %v2182_v45, %s3926_s0  ;;  %v2212_v43 = vmul.f32 %v4807_v41, %v5257_v58  ;;  %v2129_v19 = vrot.slane %v5257_v58, 1  ;;  %v2105_v57 = vrot.slane %v5257_v58, 7 }
 0x3da   : > { %v3551_v56 = vpop.f32.mrb[13].mxu0  ;;  %2285 = vrot.lane.b32.xlu0 %v2205_v26, %s3926_s0  ;;  %3571 = vmatpush3.bf16.msra.mxu1 %v3838_v18  ;;  %v5307_v29 = vmul.f32 %v5781_v62, %v5257_v58  ;;  %v5782_v26 = vld [vmem:[#allocation10_spill] sm:$0xff]  ;;  %v5784_v18 = vld [vmem:[#allocation11_spill] sm:$0xff] }
 0x3db   : > { %v2130_v17 = vrot.slane %v5272_v49, 1  ;;  %v3552_v13 = vadd.f32 %v3551_v56, %v3550_v8  ;;  %v3553_v31 = vpop.f32.mrb[14].mxu0  ;;  %v2218_v23 = vpack.c.bf16 %v2212_v43, %v2211_v6  ;;  %v2136_v39 = vsel %vm1537_vm13, %v2128_v40, %v2129_v19  ;;  %3572 = vmatprep.subr.bf16.mxu1 %v3839_v54  ;;  %v3841_v56 = vld [vmem:[%s4096_s3 + $0x70] sm:$0xff]  }
 0x3dc   : > { %v3554_v16 = vpop.f32.mrb[15].mxu0  ;;  %v2144_v60 = vmul.f32 %v5780_v33, %v2136_v39  ;;  %v2112_v38 = vsel %vm1512_vm12, %v2104_v21, %v2105_v57  ;;  %v2106_v55 = vrot.slane %v5272_v49, 7  ;;  %v5783_v21 = vld [vmem:[#allocation13_spill] sm:$0xff] }
 0x3dd   : > { %v2021_v1 = vadd.f32 %v5134_v42, %v3552_v13  ;;  %v3555_v40 = vadd.f32 %v3554_v16, %v3553_v31  ;;  %v2135_v50 = vsel %vm1537_vm13, %v2129_v19, %v2130_v17  ;;  %v5315_v52 = vmul.f32 %v2112_v38, %v5782_v26  ;;  %v5785_v26 = vld [vmem:[#allocation15_spill] sm:$0xff] }
 0x3de   : > { %2299 = vrot.lane.b32.xlu0 %v2218_v23, %s3925_s21  ;;  %v5319_v2 = vmul.f32 %v5783_v21, %v2135_v50  ;;  %v2194_v45 = vpack.c.bf16 %v2144_v60, %v5233_v27  ;;  %v2223_v6 = vmul.f32 %v4794_v3, %v2144_v60  ;;  %v2111_v42 = vsel %vm1512_vm12, %v2105_v57, %v2106_v55  ;;  %v3842_v27 = vld [vmem:[%s4096_s3 + $0x30] sm:$0xff]  }
 0x3df   : > { %v2039_v8 = vmul.f32 %v5148_v34, %v2021_v1  ;;  %v2024_v43 = vadd.f32 %v5138_v5, %v3555_v40  ;;  %v2200_v19 = vmul.f32 %v4807_v41, %v5315_v52  ;;  %v5332_v54 = vmul.f32 %v2111_v42, %v5784_v18  ;;  %3573 = vmatpush3.bf16.msra.mxu1 %v3840_v4  ;;  %v3843_v1 = vld [vmem:[%s4096_s3 + $0x78] sm:$0xff]  }
 0x3e0   : > { %v2224_v3 = vmul.f32 %v4807_v41, %v5319_v2  ;;  %v2171_v13 = vpack.c.bf16 %v5307_v29, %v5289_v51  ;;  %v5341_v57 = vmul.f32 %v4884_v47, %v2144_v60  ;;  %v5345_v5 = vmul.f32 %v5781_v62, %v5319_v2  ;;  %3574 = vmatprep.subr.bf16.mxu1 %v3841_v56  ;;  %v3844_v40 = vld [vmem:[%s4096_s3 + $0x38] sm:$0xff]   ;;  %s5801_s3 = sld [smem:[#allocation27_spill]] (!%p3494_p9) }
 0x3e1   : > { %v2053_v31 = vadd.f32 %v5155_v11, %v2039_v8  ;;  %v2040_v23 = vmul.f32 %v5148_v34, %v2024_v43  ;;  %v2206_v39 = vpack.c.bf16 %v2200_v19, %v5285_v28  ;;  %v5352_v41 = vmul.f32 %v5025_v12, %v5160_v61 }
 0x3e2   : > { %v2230_v4 = vpack.c.bf16 %v2224_v3, %v2223_v6  ;;  %2275 = vrot.lane.b32.xlu0 %v2194_v45, %s3924_s1  ;;  %v5357_v16 = vmul.f32 %v5025_v12, %v5204_v20  ;;  %v2183_v33 = vpack.c.bf16 %v5345_v5, %v5341_v57  ;;  %v2187_v34 = vpack.c.bf16 %v5332_v54, %v5315_v52  ;;  %v3855_v45 = vld [vmem:[%s5763_s25 + $0x88] sm:$0xff] }
 0x3e3   : > { %v5363_v60 = vmax.f32 %v2053_v31, 0.0  ;;  %v2054_v28 = vadd.f32 %v5155_v11, %v2040_v23  ;;  %3575 = vmatpush3.bf16.msra.mxu1 %v3842_v27  ;;  %v5372_v50 = vmul.f32 %v5781_v62, %v5315_v52  ;;  %v2201_v21 = vmul.f32 %v5785_v26, %v5332_v54  ;;  %v3856_v27 = vld [vmem:[%s5763_s25 + $0x80] sm:$0xff] }
 0x3e4   : > { %3666 = vmatmul.mubr.msk.bf16.vlgmr.msra.gmra.mrb[16].mxu0 %vm1710_vm14, %v2230_v4  ;;  %v5381_v11 = vmul.f32 %v3855_v45, %v5204_v20  ;;  %v5385_v6 = vmul.f32 %v5785_v26, %v5272_v49  ;;  %v5389_v62 = vmul.f32 %v4884_v47, %v5251_v37  ;;  %3576 = vmatprep.subr.bf16.mxu1 %v3843_v1  ;;  %v5786_v4 = vld [vmem:[#allocation14_spill] sm:$0xff] }
 0x3e5   : > { %v5391_v42 = vmax.f32 %v2054_v28, 0.0  ;;  %v2131_v8 = vrot.slane %v5363_v60, 1  ;;  %v2107_v43 = vrot.slane %v5363_v60, 7  ;;  %v5397_v19 = vmul.f32 %v4895_v46, %v5363_v60 }
 0x3e6   : > { %2287 = vrot.lane.b32.xlu0 %v2206_v39, %s3926_s0  ;;  %v5402_v20 = vmul.f32 %v5001_v44, %v5272_v49  ;;  %v5406_v47 = vmul.f32 %v5006_v53, %v5363_v60  ;;  %v5412_v56 = vmul.f32 %v5001_v44, %v5332_v54  ;;  %v5790_v37 = vpack.c.bf16 %v5164_v48, %v5160_v61 }
 0x3e7   : > { %v2161_v3 = vmul.f32 %v3856_v27, %v5391_v42  ;;  %v2134_v31 = vsel %vm1537_vm13, %v2130_v17, %v2131_v8  ;;  %v2108_v23 = vrot.slane %v5391_v42, 7  ;;  %v2132_v39 = vrot.slane %v5391_v42, 1  ;;  %3577 = vmatpush3.bf16.msra.mxu1 %v3844_v40 }
 0x3e8   : > { %v2146_v28 = vmul.f32 %v5786_v4, %v2134_v31  ;;  %v2110_v1 = vsel %vm1512_vm12, %v2106_v55, %v2107_v43  ;;  %v2219_v18 = vpack.c.bf16 %v5397_v19, %v5385_v6  ;;  %v2215_v38 = vmul.f32 %v5020_v9, %v5391_v42  ;;  %v5787_v4 = vld [vmem:[#allocation12_spill] sm:$0xff]  ;;  %v3857_v6 = vld [vmem:[%s5763_s25] sm:$0xff] }
 0x3e9   : > { %v2169_v17 = vpack.c.bf16 %v5255_v15, %v2161_v3  ;;  %v2116_v40 = vsel %vm1512_vm12, %v2108_v23, %v2101_v36  ;;  %v2133_v31 = vsel %vm1537_vm13, %v2131_v8, %v2132_v39  ;;  %v2123_v30 = vmul.f32 %v2110_v1, %v5787_v4  ;;  %v3858_v1 = vld [vmem:[%s5763_s25 + $0x78] sm:$0xff] }
 0x3ea   : > { %v2195_v55 = vpack.c.bf16 %v2146_v28, %v5319_v2  ;;  %v2117_v19 = vmul.f32 %v3857_v6, %v2116_v40  ;;  %v2147_v59 = vmul.f32 %v5788_v7, %v2133_v31  ;;  %v2225_v15 = vmul.f32 %v5785_v26, %v2146_v28  ;;  %v5789_v40 = vld [vmem:[#allocation17_spill] sm:$0xff] }
 0x3eb   : > { %2237 = vrot.lane.b32.xlu1 %v2169_v17, %s3924_s1  ;;  %v2202_v36 = vmul.f32 %v4895_v46, %v2123_v30  ;;  %v2140_v8 = vsel %vm1537_vm13, %v2132_v39, %v2125_v0  ;;  %v2109_v2 = vsel %vm1512_vm12, %v2107_v43, %v2108_v23  ;;  %v2220_v3 = vpack.c.bf16 %v5352_v41, %v2215_v38 }
 0x3ec   : > { %2277 = vrot.lane.b32.xlu0 %v2195_v55, %s3924_s1  ;;  %v2185_v7 = vpack.c.bf16 %v5193_v24, %v2117_v19  ;;  %v2226_v26 = vmul.f32 %v4895_v46, %v2147_v59  ;;  %v2148_v17 = vmul.f32 %v3858_v1, %v2140_v8  ;;  %v2124_v31 = vmul.f32 %v2109_v2, %v5789_v40 }
 0x3ed   : > { %v2207_v4 = vpack.c.bf16 %v2202_v36, %v2201_v21  ;;  %v2204_v0 = vmul.f32 %v5025_v12, %v2117_v19  ;;  %v2172_v43 = vpack.c.bf16 %v5406_v47, %v5402_v20  ;;  %v2179_v41 = vmul.f32 %v5001_v44, %v2146_v28 }
 0x3ee   : > { %v2231_v38 = vpack.c.bf16 %v2226_v26, %v2225_v15  ;;  %v2227_v24 = vmul.f32 %v5020_v9, %v2148_v17  ;;  %v2173_v23 = vmul.f32 %v3856_v27, %v2148_v17  ;;  %v2196_v46 = vpack.c.bf16 %v2148_v17, %v2147_v59 }
 0x3ef   : > { %2261 = vrot.lane.b32.xlu1 %v2185_v7, %s3925_s21  ;;  %v2203_v39 = vmul.f32 %v5020_v9, %v2124_v31  ;;  %v2180_v55 = vmul.f32 %v5006_v53, %v2147_v59  ;;  %v2188_v6 = vpack.c.bf16 %v2124_v31, %v2123_v30  ;;  %v2149_v21 = vmul.f32 %v3856_v27, %v2124_v31 }
 0x3f0   : > { %3669 = vmatprep.mubr.msk.bf16.mxu0 %vm1710_vm14, %v2231_v38  ;;  %2289 = vrot.lane.b32.xlu0 %v2207_v4, %s3926_s0  ;;  %v2232_v12 = vpack.c.bf16 %v5357_v16, %v2227_v24  ;;  %v2181_v44 = vpack.c.bf16 %v5381_v11, %v2173_v23  ;;  %v2150_v20 = vmul.f32 %v3855_v45, %v2117_v19 }
 0x3f1   : > { %v2208_v47 = vpack.c.bf16 %v2204_v0, %v2203_v39  ;;  %v2184_v28 = vpack.c.bf16 %v2180_v55, %v2179_v41  ;;  %v2192_v15 = vpack.c.bf16 %v5391_v42, %v5363_v60  ;;  %v5478_v9 = vmul.f32 %v5006_v53, %v2123_v30 }
 0x3f2   : > { %3670 = vmatmul.mubr.msk.bf16.gmra.mrb[20].mxu0 %vm1710_vm14, %v2232_v12  ;;  %v2157_v59 = vpack.c.bf16 %v2150_v20, %v2149_v21  ;;  %v5791_v61 = vpack.c.bf16 %v5196_v25, %v5184_v32  ;;  %v5792_v32 = vpack.c.bf16 %v5270_v35, %v5266_v14  ;;  %v5793_v1 = vpack.c.bf16 %v5272_v49, %v5257_v58 }
 0x3f3   : > { %2249 = vrot.lane.b32.xlu1 %v2181_v44, %s3926_s0  ;;  %v2160_v27 = vpack.c.bf16 %v5478_v9, %v5412_v56  ;;  %v5794_v14 = vpack.c.bf16 %v5372_v50, %v5389_v62 }
 0x3f4   : > { %2301 = vrot.lane.b32.xlu0 %v2219_v18, %s3925_s21 }
 0x3f7   : > { %2263 = vrot.lane.b32.xlu1 %v2186_v63, %s3925_s21 }
 0x3f8   : > { %2279 = vrot.lane.b32.xlu0 %v2196_v46, %s3924_s1 }
 0x3fb   : > { %2241 = vrot.lane.b32.xlu1 %v2171_v13, %s3924_s1 }
 0x3fc   : > { %2291 = vrot.lane.b32.xlu0 %v2208_v47, %s3926_s0 }
 0x3ff   : > { %2253 = vrot.lane.b32.xlu1 %v2183_v33, %s3926_s0 }
 0x400   : > { %2303 = vrot.lane.b32.xlu0 %v2220_v3, %s3925_s21 }
 0x403   : > { %2265 = vrot.lane.b32.xlu1 %v2187_v34, %s3925_s21 }
 0x407   : > { %2243 = vrot.lane.b32.xlu1 %v2172_v43, %s3924_s1  ;;  %s5799_s1 = scalar_lea.vmem %s5713_s16, %s4072_s24 }
 0x40b   : > { %2255 = vrot.lane.b32.xlu1 %v2184_v28, %s3926_s0  ;;  %s5795_s0 = scalar_lea.vmem %s5708_s11, %s4072_s24 }
 0x40f   : > { %2267 = vrot.lane.b32.xlu1 %v2188_v6, %s3925_s21 }
 0x444   : > { %v2298_v53 = vpop.permute.xlu0 %2297  ;;  %v2240_v13 = vpop.permute.xlu1 %2239 }
 0x445   : > { %v2310_v25 = vsel %vm1710_vm14, %v5792_v32, %v2240_v13  ;;  %v3479_v13 = vld [vmem:[%s756_s20] ss:$0 sm:$0xff] }
 0x448   : > { %v2274_v22 = vpop.permute.xlu0 %2273 }
 0x449   : > { %v2339_v63 = vsel %vm1710_vm14, %v5790_v37, %v2274_v22  ;;  %v3927_v22 = vmov 0.0  }
 0x44a   : > { %3673 = vmatprep.subr.bf16.mxu1 %v3927_v22 }
 0x44b   : > { %v2252_v57 = vpop.permute.xlu1 %2251 }
 0x44c   : > { %v2286_v51 = vpop.permute.xlu0 %2285  ;;  %v2320_v26 = vsel %vm1723_vm15, %v2310_v25, %v2252_v57 }
 0x44d   : > { %v2350_v30 = vsel %vm1723_vm15, %v2339_v63, %v2286_v51  ;;  %v3478_v63 = vld [vmem:[%s5795_s0] ss:$0 sm:$0xff] }
 0x44e   : > { %v2358_v29 = vsel %vm1732_vm0, %v2350_v30, %v2298_v53 }
 0x44f   : > { %2521 = vmatprep.mubr.bf16.mxu1 %v2358_v29 }
 0x450   : > { %v2300_v52 = vpop.permute.xlu0 %2299 }
 0x454   : > { %v2276_v54 = vpop.permute.xlu0 %2275 }
 0x455   : > { %v2342_v48 = vsel %vm1710_vm14, %v5791_v61, %v2276_v54 }
 0x458   : > { %v2288_v5 = vpop.permute.xlu0 %2287 }
 0x459   : > { %v2352_v45 = vsel %vm1723_vm15, %v2342_v48, %v2288_v5 }
 0x45a   : > { %v2361_v8 = vsel %vm1732_vm0, %v2352_v45, %v2300_v52 }
 0x45d   : > { %v2238_v16 = vpop.permute.xlu1 %2237 }
 0x45e   : > { %v2278_v33 = vpop.permute.xlu0 %2277  ;;  %v2307_v11 = vsel %vm1710_vm14, %v2157_v59, %v2238_v16 }
 0x45f   : > { %v2345_v17 = vsel %vm1710_vm14, %v5793_v1, %v2278_v33 }
 0x461   : > { %v2262_v34 = vpop.permute.xlu1 %2261 }
 0x462   : > { %v2290_v60 = vpop.permute.xlu0 %2289 }
 0x463   : > { %v2354_v40 = vsel %vm1723_vm15, %v2345_v17, %v2290_v60 }
 0x465   : > { %v2250_v42 = vpop.permute.xlu1 %2249 }
 0x466   : > { %v2318_v18 = vsel %vm1723_vm15, %v2307_v11, %v2250_v42  ;;  %v2302_v19 = vpop.permute.xlu0 %2301 }
 0x467   : > { %v2326_v36 = vsel %vm1732_vm0, %v2318_v18, %v2262_v34  ;;  %v2364_v0 = vsel %vm1732_vm0, %v2354_v40, %v2302_v19 }
 0x468   : > { %2522 = vmatmul.mubr.bf16.vlgmr.msra.gmra.mrb[8].mxu1 %v2326_v36 }
 0x469   : > { %2529 = vmatprep.mubr.bf16.mxu1 %v2361_v8  ;;  %v2264_v2 = vpop.permute.xlu1 %2263 }
 0x46a   : > { %v2280_v3 = vpop.permute.xlu0 %2279  ;;  %v2329_v4 = vsel %vm1732_vm0, %v2320_v26, %v2264_v2 }
 0x46b   : > { %v2348_v38 = vsel %vm1710_vm14, %v2192_v15, %v2280_v3 }
 0x46d   : > { %v2242_v7 = vpop.permute.xlu1 %2241 }
 0x46e   : > { %v2292_v31 = vpop.permute.xlu0 %2291  ;;  %v2313_v35 = vsel %vm1710_vm14, %v5794_v14, %v2242_v7 }
 0x46f   : > { %v2356_v23 = vsel %vm1723_vm15, %v2348_v38, %v2292_v31 }
 0x470   : > { %2530 = vmatmul.mubr.bf16.gmra.mrb[12].mxu1 %v2329_v4 }
 0x471   : > { %v2254_v43 = vpop.permute.xlu1 %2253  ;;  %2537 = vmatprep.mubr.bf16.mxu1 %v2364_v0 }
 0x472   : > { %v2322_v41 = vsel %vm1723_vm15, %v2313_v35, %v2254_v43  ;;  %v2304_v58 = vpop.permute.xlu0 %2303 }
 0x473   : > { %v2367_v46 = vsel %vm1732_vm0, %v2356_v23, %v2304_v58 }
 0x475   : > { %v2266_v49 = vpop.permute.xlu1 %2265 }
 0x476   : > { %v2332_v24 = vsel %vm1732_vm0, %v2322_v41, %v2266_v49 }
 0x478   : > { %2538 = vmatmul.mubr.bf16.gmra.mrb[16].mxu1 %v2332_v24 }
 0x479   : > { %v2244_v39 = vpop.permute.xlu1 %2243  ;;  %2545 = vmatprep.mubr.bf16.mxu1 %v2367_v46 }
 0x47a   : > { %v2316_v50 = vsel %vm1710_vm14, %v2160_v27, %v2244_v39 }
 0x47d   : > { %v2256_v55 = vpop.permute.xlu1 %2255 }
 0x47e   : > { %v2324_v62 = vsel %vm1723_vm15, %v2316_v50, %v2256_v55 }
 0x481   : > { %v2268_v6 = vpop.permute.xlu1 %2267 }
 0x482   : > { %v2335_v21 = vsel %vm1732_vm0, %v2324_v62, %v2268_v6 }
 0x483   : > { %2546 = vmatmul.mubr.bf16.gmra.mrb[20].mxu1 %v2335_v21 }
 0x484   : > { %3681 = vmatprep.mubr.msk.bf16.mxu1 %vm3928_vm1, %v3927_v22 }
 0x4b7   : > { %v3667_v12 = vpop.f32.mrb[16].mxu0 }
 0x4b8   : > { %v2588_v44 = vpop.f32.mrb[17].mxu0 }
 0x4b9   : > { %v3668_v20 = vpop.f32.mrb[18].mxu0 }
 0x4ba   : > { %v2591_v47 = vpop.f32.mrb[19].mxu0 }
 0x4c5   : > { %v3671_v28 = vpop.f32.mrb[20].mxu0 }
 0x4c6   : > { %v2604_v15 = vpop.f32.mrb[21].mxu0 }
 0x4c7   : > { %v3672_v59 = vpop.f32.mrb[22].mxu0 }
 0x4c8   : > { %v2607_v53 = vpop.f32.mrb[23].mxu0 }
 0x53b   : > { %v3578_v56 = vpop.f32.mrb[8].mxu1 }
 0x53c   : > { %v3579_v9 = vpop.f32.mrb[9].mxu1 }
 0x53d   : > { %v3580_v27 = vadd.f32 %v3579_v9, %v3578_v56  ;;  %v3581_v37 = vpop.f32.mrb[10].mxu1  ;;  %v2759_v9 = vld [vmem:[%s4124_s22] sm:$0x3] }
 0x53e   : > { %v3582_v51 = vpop.f32.mrb[11].mxu1 }
 0x53f   : > { %v2589_v30 = vadd.f32 %v3580_v27, %v2588_v44  ;;  %v3583_v29 = vadd.f32 %v3582_v51, %v3581_v37  ;;  %v3845_v44 = vld [vmem:[%s4110_s4] sm:$0xff]   ;;  %v2767_v27 = vsel %vm2765_vm2, %v2759_v9, 0 }
 0x540   : > { %v2701_v37 = vld [vmem:[%s5797_s27] sm:$0x1]  ;;  %s5803_s27 = sld [smem:[#allocation28_spill]] (!%p3494_p9) }
 0x541   : > { %v2625_v52 = vmul.f32 %v3478_v63, %v2589_v30  ;;  %v2592_v54 = vadd.f32 %v3583_v29, %v2591_v47 }
 0x543   : > { %v2626_v57 = vmul.f32 %v3478_v63, %v2592_v54  ;;  %v3584_v5 = vpop.f32.mrb[12].mxu1  ;;  %v5562_v33 = vadd.f32 %v3479_v13, %v2625_v52 }
 0x544   : > { %v3585_v16 = vpop.f32.mrb[13].mxu1 }
 0x545   : > { %v5564_v34 = vadd.f32 %v3479_v13, %v2626_v57  ;;  %v3586_v60 = vadd.f32 %v3585_v16, %v3584_v5  ;;  %v3587_v61 = vpop.f32.mrb[14].mxu1  ;;  %v2760_v57 = vld [vmem:[%s5799_s1] sm:$0x1] }
 0x546   : > { %v3588_v48 = vpop.f32.mrb[15].mxu1 }
 0x547   : > { %v2597_v45 = vadd.f32 %v3667_v12, %v3586_v60  ;;  %v3589_v11 = vadd.f32 %v3588_v48, %v3587_v61  ;;  %v2648_v42 = vpack.c.bf16 %v5564_v34, %v5562_v33  ;;  %v2647_v12 = vld [vmem:[%s5796_s23] sm:$0x1] }
 0x549   : > { %v2627_v18 = vmul.f32 %v3478_v63, %v2597_v45  ;;  %v2600_v19 = vadd.f32 %v3668_v20, %v3589_v11  ;;  %3674 = vmatpush3.bf16.msra.mxu1 %v2648_v42  ;;  %v3846_v20 = vld [vmem:[%s4110_s4 + $0x8] sm:$0xff]  }
 0x54a   : > { %3675 = vmatprep.subr.bf16.mxu1 %v3927_v22 }
 0x54b   : > { %v2628_v36 = vmul.f32 %v3478_v63, %v2600_v19  ;;  %v3590_v8 = vpop.f32.mrb[16].mxu1  ;;  %v5569_v3 = vadd.f32 %v3479_v13, %v2627_v18  ;;  %v3929_v19 = vmov 0  }
 0x54c   : > { %v3591_v2 = vpop.f32.mrb[17].mxu1 }
 0x54d   : > { %v5571_v32 = vadd.f32 %v3479_v13, %v2628_v36  ;;  %v3592_v25 = vadd.f32 %v3591_v2, %v3590_v8  ;;  %v3593_v7 = vpop.f32.mrb[18].mxu1  ;;  %v2859_v36 = vsel %vm2857_vm5, 65535, %v3929_v19  ;;  %v3870_v19 = vld [vmem:[%s5801_s3 + $0x1c] ss:$12 sps:$4 sm:$0xff] (!%p3494_p9)  }
 0x54e   : > { %v3594_v26 = vpop.f32.mrb[19].mxu1 }
 0x54f   : > { %v2605_v1 = vadd.f32 %v3592_v25, %v2604_v15  ;;  %v3595_v17 = vadd.f32 %v3594_v26, %v3593_v7  ;;  %v2649_v40 = vpack.c.bf16 %v5571_v32, %v5569_v3  ;;  %v3848_v25 = vld [vmem:[%s5798_s17 + $0x8] sm:$0xff]   ;;  %v3849_v7 = vld [vmem:[%s5798_s17 + $0x10] sm:$0xff]   ;;  %v3850_v26 = vld [vmem:[%s5798_s17 + $0x18] sm:$0xff]  }
 0x551   : > { %v2629_v31 = vmul.f32 %v3478_v63, %v2605_v1  ;;  %v2608_v4 = vadd.f32 %v3595_v17, %v2607_v53  ;;  %3676 = vmatpush3.bf16.msra.mxu1 %v2649_v40 }
 0x552   : > { %3677 = vmatprep.subr.bf16.mxu1 %v3927_v22 }
 0x553   : > { %v2630_v0 = vmul.f32 %v3478_v63, %v2608_v4  ;;  %v5576_v43 = vadd.f32 %v3479_v13, %v2629_v31 }
 0x555   : > { %v5578_v14 = vadd.f32 %v3479_v13, %v2630_v0  ;;  %v3859_v0 = vld [vmem:[#allocation2 + $0x10] sm:$0xff] }
 0x556   : > { %v3596_v35 = vpop.f32.mrb[20].mxu1 }
 0x557   : > { %v3597_v41 = vpop.f32.mrb[21].mxu1  ;;  %v2650_v58 = vpack.c.bf16 %v5578_v14, %v5576_v43 }
 0x558   : > { %v3598_v49 = vadd.f32 %v3597_v41, %v3596_v35  ;;  %v3599_v38 = vpop.f32.mrb[22].mxu1 }
 0x559   : > { %v3600_v24 = vpop.f32.mrb[23].mxu1  ;;  %3678 = vmatpush3.bf16.msra.mxu1 %v2650_v58 }
 0x55a   : > { %v2613_v23 = vadd.f32 %v3671_v28, %v3598_v49  ;;  %v3601_v46 = vadd.f32 %v3600_v24, %v3599_v38  ;;  %3679 = vmatprep.subr.bf16.mxu1 %v3927_v22  ;;  %v3860_v49 = vld [vmem:[#allocation2] sm:$0xff] }
 0x55c   : > { %v2631_v39 = vmul.f32 %v3478_v63, %v2613_v23  ;;  %v2616_v55 = vadd.f32 %v3672_v59, %v3601_v46  ;;  %v3861_v46 = vld [vmem:[#allocation2 + $0x18] sm:$0xff] }
 0x55e   : > { %v2632_v50 = vmul.f32 %v3478_v63, %v2616_v55  ;;  %v5583_v62 = vadd.f32 %v3479_v13, %v2631_v39 }
 0x560   : > { %v5585_v6 = vadd.f32 %v3479_v13, %v2632_v50  ;;  %v3862_v50 = vld [vmem:[#allocation2 + $0x8] sm:$0xff] }
 0x562   : > { %v2651_v21 = vpack.c.bf16 %v5585_v6, %v5583_v62 }
 0x564   : > { %3680 = vmatpush3.bf16.msra.mxu1 %v2651_v21 }
 0x565   : > { %3685 = vmatprep.subr.bf16.mxu1 %v3927_v22 }
 0x567   : > { %3682 = vmatmul.mubr.msk.bf16.vlgmr.msra.gmra.mrb[24].mxu1 %vm1723_vm15, %v2647_v12 }
 0x568   : > { %3686 = vmatpush3.bf16.msra.mxu1 %v3845_v44  ;;  %3689 = vmatprep.mubr.msk.bf16.mxu1 %vm3928_vm1, %v3927_v22 }
 0x569   : > { %3687 = vmatprep.subr.bf16.mxu1 %v3927_v22 }
 0x56c   : > { %3688 = vmatpush3.bf16.msra.mxu1 %v3846_v20 }
 0x56d   : > { %3693 = vmatprep.subr.bf16.mxu1 %v3927_v22 }
 0x63a   : > { %v2689_v47 = vpop.f32.mrb[24].mxu1 }
 0x63b   : > { %v2695_v28 = vmul.f32 0.015625, %v2689_v47  ;;  %v3683_v15 = vpop.f32.mrb[25].mxu1  ;;  %v3863_v47 = vld [vmem:[#allocation2 + $0x30] sm:$0xff] }
 0x63c   : > { %v2692_v59 = vpop.f32.mrb[26].mxu1 }
 0x63d   : > { %v2696_v53 = vpack.c.bf16 %v2695_v28, %v2695_v28  ;;  %v3684_v56 = vpop.f32.mrb[27].mxu1 }
 0x63f   : > { %3690 = vmatmul.mubr.msk.bf16.vlgmr.msra.gmra.mrb[28].mxu1 %vm1710_vm14, %v2696_v53  ;;  %v3864_v53 = vld [vmem:[#allocation2 + $0x20] sm:$0xff] }
 0x640   : > { %3695 = vmatprep.mubr.msk.bf16.mxu1 %vm3928_vm1, %v3927_v22  ;;  %3694 = vmatpush3.bf16.msra.mxu1 %v2767_v27  ;;  %v3847_v22 = vld [vmem:[%s5798_s17] sm:$0xff]  }
 0x641   : > { %3701 = vmatprep.mubr.msk.bf16.mxu0 %vm2844_vm4, %v3847_v22 }
 0x712   : > { %v2751_v63 = vpop.f32.mrb[28].mxu1 }
 0x713   : > { %v2752_v51 = vadd.f32 %v2751_v63, %v2701_v37  ;;  %v3691_v30 = vpop.f32.mrb[29].mxu1  ;;  %v3865_v37 = vld [vmem:[#allocation2 + $0x38] sm:$0xff] }
 0x714   : > { %v2754_v29 = vpop.f32.mrb[30].mxu1 }
 0x715   : > { %v2757_v52 = vmax.f32 %v2752_v51, 0.0  ;;  %v3692_v54 = vpop.f32.mrb[31].mxu1 }
 0x716   : > { %v3930_v54 = vmov (!%p3494_p9), 0.0  }
 0x717   : > { %v2758_v13 = vpack.c.bf16 %v2757_v52, %v2757_v52 }
 0x719   : > { %3696 = vmatmul.mubr.msk.bf16.vlgmr.msra.gmra.mrb[32].mxu1 %vm2761_vm3, %v2758_v13 }
 0x7ec   : > { %v2803_v5 = vpop.f32.mrb[32].mxu1 }
 0x7ed   : > { %v2804_v16 = vadd.f32 %v2803_v5, %v2760_v57  ;;  %v3697_v60 = vpop.f32.mrb[33].mxu1 }
 0x7ee   : > { %v2806_v61 = vpop.f32.mrb[34].mxu1  ;;  %v3867_v60 = vld [vmem:[%s5801_s3 + $0x4] ss:$12 sps:$4 sm:$0xff] (!%p3494_p9)  }
 0x7ef   : > { %v3485_v48 = vmul.f32 -1.442695, %v2804_v16  ;;  %v3698_v45 = vpop.f32.mrb[35].mxu1  ;;  %v3869_v61 = vld [vmem:[%s5801_s3] ss:$12 sps:$4 sm:$0xff] (!%p3494_p9)   ;;  %3082 = vmatprep.subr.bf16.mxu1 (!%p3494_p9), %v3867_v60 }
 0x7f0   : > { %3083 = vmatpush1.bf16.msra.mxu1 (!%p3494_p9), %v3869_v61 }
 0x7f1   : > { %3851 = vpow2.f32 %v3485_v48  ;;  %3084 = vmatprep.subr.bf16.mxu1 (!%p3494_p9), %v3870_v19 }
 0x7fb   : > { %v3852_v11 = vpop.eup %3851 }
 0x7fc   : > { %v2812_v42 = vadd.f32 1.0, %v3852_v11 }
 0x7fe   : > { %3853 = vrcp.f32 %v2812_v42 }
 0x808   : > { %v3854_v18 = vpop.eup %3853 }
 0x809   : > { %v2823_v8 = vpack.c.bf16 %v3854_v18, %v3854_v18  ;;  %v2972_v18 = vld [vmem:[%s5802_s18] sm:$0x1] (!%p3494_p9) }
 0x80b   : > { %v2861_v2 = vand.u32 %v2859_v36, %v2823_v8  ;;  %v3872_v36 = vld [vmem:[%s5801_s3 + $0x18] ss:$12 sps:$4 sm:$0xff] (!%p3494_p9)   ;;  %v3932_v8 = vmov (!%p3494_p9), 0  }
 0x80c   : > { %3085 = vmatpush1.bf16.msra.mxu1 (!%p3494_p9), %v3872_v36  ;;  %3114 = vmatprep.mubr.bf16.mxu1 (!%p3494_p9), %v3932_v8 }
 0x80d   : > { %3699 = vmatprep.subr.bf16.mxu0 %v2861_v2  ;;  %3721 = vmatprep.subr.bf16.mxu1 (!%p3494_p9), %v3930_v54 }
 0x80e   : > { %3700 = vmatpush3.bf16.msra.mxu0 %v2861_v2 }
 0x80f   : > { %3709 = vmatprep.subr.bf16.mxu0 (!%p3494_p9), %v3930_v54 }
 0x811   : > { %3702 = vmatmul.mubr.msk.bf16.vlgmr.msra.gmra.mrb[24].mxu0 %vm2844_vm4, %v3848_v25 }
 0x812   : > { %3705 = vmatprep.mubr.msk.bf16.mxu0 %vm2844_vm4, %v3849_v7 }
 0x819   : > { %3706 = vmatmul.mubr.msk.bf16.gmra.mrb[28].mxu0 %vm2844_vm4, %v3850_v26 }
 0x81a   : > { %3717 = vmatprep.mubr.msk.bf16.mxu0 (!%p3494_p9), %vm3931_vm6, %v3930_v54 }
 0x8e4   : > { %v3703_v1 = vpop.f32.mrb[24].mxu0 }
 0x8e5   : > { %v2930_v17 = vmul.f32 %v3703_v1, %v5569_v3  ;;  %v2897_v40 = vpop.f32.mrb[25].mxu0  ;;  %v3873_v1 = vld [vmem:[%s5801_s3 + $0x8] ss:$12 sps:$4 sm:$0xff] (!%p3494_p9)  }
 0x8e6   : > { %v2928_v31 = vmul.f32 %v2897_v40, %v5562_v33  ;;  %v3704_v4 = vpop.f32.mrb[26].mxu0 }
 0x8e7   : > { %v2938_v35 = vadd.f32 %v3859_v0, %v2930_v17  ;;  %v2931_v41 = vmul.f32 %v3704_v4, %v5571_v32  ;;  %v2900_v58 = vpop.f32.mrb[27].mxu0  ;;  %v3066_v4 = vsub.s32 (!%p3494_p9), 0, %v4661_v10  ;;  %v3030_v0 = vld [vmem:[%s5803_s27] sm:$0x7] (!%p3494_p9) }
 0x8e8   : > { %v2936_v38 = vadd.f32 %v3860_v49, %v2928_v31  ;;  %v2929_v24 = vmul.f32 %v2900_v58, %v5564_v34  ;;  %v3874_v31 = vld [vmem:[%s5801_s3 + $0x20] ss:$12 sps:$4 sm:$0xff] (!%p3494_p9)   ;;  %v3933_v49 = vmov (!%p3494_p9), 1966171168  }
 0x8e9   : > { %v2946_v23 = vmax.f32 %v2938_v35, 0.0  ;;  %v2939_v39 = vadd.f32 %v3861_v46, %v2931_v41  ;;  %v3070_v35 = vsub.s32 (!%p3494_p9), 1, %v4661_v10  ;;  %v3067_v41 = vrot.slane (!%p3494_p9), %v3030_v0, %v3066_v4 }
 0x8ea   : > { %v2944_v55 = vmax.f32 %v2936_v38, 0.0  ;;  %v2937_v21 = vadd.f32 %v3862_v50, %v2929_v24  ;;  %v3168_v38 = vunpack.c.l.s4 (!%p3494_p9), %v3933_v49 }
 0x8eb   : > { %2954 = vst.msk [vmem:[#allocation2 + $0x10] sm:$0xff] %vm1710_vm14, %v2946_v23  ;;  %v2947_v3 = vmax.f32 %v2939_v39, 0.0  ;;  %v3071_v58 = vrot.slane (!%p3494_p9), %v3030_v0, %v3070_v35  ;;  %v3074_v39 = vsub.s32 (!%p3494_p9), 2, %v4661_v10 }
 0x8ec   : > { %2952 = vst.msk [vmem:[#allocation2] sm:$0xff] %vm1710_vm14, %v2944_v55  ;;  %v2945_v33 = vmax.f32 %v2937_v21, 0.0  ;;  %v3707_v12 = vpop.f32.mrb[28].mxu0  ;;  %v3169_v21 = vunpack.c.0.s8 (!%p3494_p9), %v3168_v38 }
 0x8ed   : > { %2955 = vst.msk [vmem:[#allocation2 + $0x18] sm:$0xff] %vm1710_vm14, %v2947_v3  ;;  %v2934_v32 = vmul.f32 %v3707_v12, %v5583_v62  ;;  %v2913_v44 = vpop.f32.mrb[29].mxu0  ;;  %v3866_v62 = vld [vmem:[#allocation2 + $0x28] sm:$0xff]  ;;  %v3075_v12 = vrot.slane (!%p3494_p9), %v3030_v0, %v3074_v39 }
 0x8ee   : > { %2953 = vst.msk [vmem:[#allocation2 + $0x8] sm:$0xff] %vm1710_vm14, %v2945_v33  ;;  %v2932_v34 = vmul.f32 %v2913_v44, %v5576_v43  ;;  %v3708_v20 = vpop.f32.mrb[30].mxu0 }
 0x8ef   : > { %v2942_v28 = vadd.f32 %v3863_v47, %v2934_v32  ;;  %v2935_v15 = vmul.f32 %v3708_v20, %v5585_v6  ;;  %v2916_v59 = vpop.f32.mrb[31].mxu0  ;;  %v3172_v32 = vsub.s32 (!%p3494_p9), %v3169_v21, %v4661_v10 }
 0x8f0   : > { %v2940_v56 = vadd.f32 %v3864_v53, %v2932_v34  ;;  %v2933_v9 = vmul.f32 %v2916_v59, %v5578_v14  ;;  %2963 = sbr.rel (%p3494_p9) target bundleno = 2756 (0xac4), region = 104 }
 0x8f1   : > { %v2950_v27 = vmax.f32 %v2942_v28, 0.0  ;;  %v2943_v63 = vadd.f32 %v3865_v37, %v2935_v15 }
 0x8f2   : > { %v2948_v51 = vmax.f32 %v2940_v56, 0.0  ;;  %v2941_v30 = vadd.f32 %v3866_v62, %v2933_v9  ;;  %v2966_v52 = vld [vmem:[#allocation2 + $0x10] sm:$0xff] (!%p3494_p9)  ;;  %v5804_v56 = vlaneseq (!%p3494_p9) }
 0x8f3   : > { %2958 = vst.msk [vmem:[#allocation2 + $0x30] sm:$0xff] %vm1710_vm14, %v2950_v27  ;;  %v2951_v29 = vmax.f32 %v2943_v63, 0.0  ;;  %v2964_v14 = vld [vmem:[#allocation2] sm:$0xff] (!%p3494_p9) }
 0x8f4   : > { %2956 = vst.msk [vmem:[#allocation2 + $0x20] sm:$0xff] %vm1710_vm14, %v2948_v51  ;;  %v2949_v43 = vmax.f32 %v2941_v30, 0.0  ;;  %v2967_v22 = vld [vmem:[#allocation2 + $0x18] sm:$0xff] (!%p3494_p9)  ;;  %vm3192_vm7 = vcmp.lt.s32.totalorder (!%p3494_p9), %v5804_v56, 320 }
 0x8f5   : > { %2959 = vst.msk [vmem:[#allocation2 + $0x38] sm:$0xff] %vm1710_vm14, %v2951_v29  ;;  %v2965_v6 = vld [vmem:[#allocation2 + $0x8] sm:$0xff] (!%p3494_p9)  ;;  %v2974_v16 = vpack.c.bf16 (!%p3494_p9), %v2967_v22, %v2966_v52 }
 0x8f6   : > { %2957 = vst.msk [vmem:[#allocation2 + $0x28] sm:$0xff] %vm1710_vm14, %v2949_v43  ;;  %v2973_v13 = vpack.c.bf16 (!%p3494_p9), %v2965_v6, %v2964_v14 }
 0x8f8   : > { %3710 = vmatpush3.bf16.msra.mxu0 %v2973_v13 }
 0x8f9   : > { %3711 = vmatprep.subr.bf16.mxu0 %v3930_v54 }
 0x8fa   : > { %v2970_v45 = vld [vmem:[#allocation2 + $0x30] sm:$0xff] }
 0x8fb   : > { %v2968_v57 = vld [vmem:[#allocation2 + $0x20] sm:$0xff] }
 0x8fc   : > { %3712 = vmatpush3.bf16.msra.mxu0 %v2974_v16  ;;  %v2971_v11 = vld [vmem:[#allocation2 + $0x38] sm:$0xff] }
 0x8fd   : > { %v2969_v5 = vld [vmem:[#allocation2 + $0x28] sm:$0xff]  ;;  %3713 = vmatprep.subr.bf16.mxu0 %v3930_v54  ;;  %v2976_v42 = vpack.c.bf16 %v2971_v11, %v2970_v45 }
 0x8fe   : > { %v2975_v48 = vpack.c.bf16 %v2969_v5, %v2968_v57 }
 0x900   : > { %3714 = vmatpush3.bf16.msra.mxu0 %v2975_v48 }
 0x901   : > { %3715 = vmatprep.subr.bf16.mxu0 %v3930_v54 }
 0x904   : > { %3716 = vmatpush3.bf16.msra.mxu0 %v2976_v42 }
 0x907   : > { %3718 = vmatmul.mubr.msk.bf16.vlgmr.msra.gmra.mrb[0].mxu0 %vm1723_vm15, %v2972_v18 }
 0x9da   : > { %v3014_v2 = vpop.f32.mrb[0].mxu0 }
 0x9db   : > { %v3020_v25 = vmul.f32 0.015625, %v3014_v2  ;;  %v3719_v7 = vpop.f32.mrb[1].mxu0 }
 0x9dc   : > { %v3017_v26 = vpop.f32.mrb[2].mxu0 }
 0x9dd   : > { %v3021_v17 = vpack.c.bf16 %v3020_v25, %v3020_v25  ;;  %v3720_v40 = vpop.f32.mrb[3].mxu0 }
 0x9df   : > { %3502 = vmatmul.mubr.msk.bf16.vlgmr.msra.gmra.mrb[0].mxu1 %vm1710_vm14, %v3021_v17 }
 0x9e0   : > { %3722 = vmatpush3.bf16.msra.mxu1 %v3873_v1  ;;  %3725 = vmatprep.mubr.msk.bf16.mxu1 %vm3931_vm6, %v3930_v54 }
 0x9e1   : > { %3723 = vmatprep.subr.bf16.mxu1 %v3930_v54 }
 0x9e4   : > { %3724 = vmatpush3.bf16.msra.mxu1 %v3874_v31 }
 0x9e7   : > { %3726 = vmatmul.mubr.msk.bf16.vlgmr.msra.gmra.mrb[4].mxu1 %vm1710_vm14, %v3021_v17 }
 0xab2   : > { %v3116_v24 = vpop.f32.mrb[0].mxu1 }
 0xab3   : > { %v3117_v23 = vadd.f32 %v3116_v24, %v3067_v41  ;;  %v3118_v46 = vpop.f32.mrb[1].mxu1 }
 0xab4   : > { %v3119_v55 = vadd.f32 %v3118_v46, %v3071_v58  ;;  %v3120_v50 = vpop.f32.mrb[2].mxu1 }
 0xab5   : > { %v3121_v3 = vpop.f32.mrb[3].mxu1 }
 0xab6   : > { %v3166_v33 = vcombine.low %v3117_v23, %v3119_v55 }
 0xab8   : > { %v3173_v28 = vrot.slane %v3166_v33, %v3172_v32 }
 0xaba   : > { %v3157_v44 = vpop.f32.mrb[4].mxu1 }
 0xabb   : > { %v3158_v34 = vadd.f32 %v3157_v44, %v3075_v12  ;;  %v3727_v20 = vpop.f32.mrb[5].mxu1 }
 0xabc   : > { %v3160_v47 = vpop.f32.mrb[6].mxu1 }
 0xabd   : > { %v3180_v15 = vrot.slane %v3158_v34, %v3172_v32  ;;  %v3728_v59 = vpop.f32.mrb[7].mxu1 }
 0xabf   : > { %v3181_v53 = vcombine.low %v3173_v28, %v3180_v15 }
 0xac1   : > { %v3188_v9 = vrot.slane %v3181_v53, %v3172_v32 }
 0xac3   : > { %3194 = vst.msk [vmem:[%s4132_s28] sm:$0x7] %vm3192_vm7, %v3188_v9 }
 0xac4 PF: > { %s5805_s6 = sld [smem:[#allocation6_spill]]  ;;  %s5806_s0 = sld [smem:[#allocation4_spill]] }
 0xac5   : > { %s5807_s30 = sld [smem:[#allocation5_spill]]  ;;  %s5808_s20 = sld [smem:[#allocation7_spill]] }
 0xac6   : > { %s5809_s21 = sld [smem:[#allocation8_spill]] }
 0xaca   : > { %s29_s1 = sadd.s32 1, %s5805_s6  }
 0xacb   : > { %p26_p10 = scmp.ge.s32.totalorder %s29_s1, 6  }
 0xacd   :  { %28 = sbr.rel (!%p26_p10) target bundleno = 11 (0xb), region = 170 }

</bundles_post_ra>
